<compile_context>
chip_gen: v5e
topology: v5e:2x2
jax: 0.10.0
libtpu: 0.0.40
codegen_flags: <defaults>
</compile_context>

<pallas_src>
import functools
import math
import random

import numpy as np
import jax
import jax.numpy as jnp
from jax import lax
from jax.experimental import pallas as pl
from jax.experimental.pallas import tpu as pltpu

IN_DIM = 256      # 16*16 flattened member
H1 = 128
H2 = 64           # real fc2 width
H2P = 128         # fc2 padded to 128 lanes (zero weight cols / zero bias)
DNA_DIM = 32      # real fc3 width
PAD_OUT = 128     # fc3 padded to 128 lanes -> lane-dense DNA output
TILE_M = 128      # row tile per grid step (keep 128; bump to 256 on v6e/v7x
                  # only once populations are non-trivial)
MIN_B = 128       # minimum padded batch (one full row tile)


def _bucket(n):
    n = max(int(n), 1)
    return max(MIN_B, 1 << (n - 1).bit_length())


def _pad_rows(x, rows):
    b = int(x.shape[0])
    if b == rows:
        return x
    return jnp.pad(x, ((0, rows - b), (0, 0)))


# ----------------------------------------------------------------------------
# Kernel A: to_dna MLP over a row tile.  bf16 on the MXU, f32 elementwise.
# Outputs: dna (f32, pad lanes masked to 0) and L2-normalised dna (bf16).
# ----------------------------------------------------------------------------
def _dna_kernel(x_ref, w1_ref, b1_ref, w2_ref, b2_ref, w3_ref, b3_ref,
                dna_ref, dnn_ref):
    x = x_ref[...]                                              # bf16 (T, 256)
    h = jnp.dot(x, w1_ref[...], preferred_element_type=jnp.float32) + b1_ref[...]
    h = jnp.maximum(h, 0.0)
    h = jnp.dot(h.astype(jnp.bfloat16), w2_ref[...],
                preferred_element_type=jnp.float32) + b2_ref[...]
    h = jnp.maximum(h, 0.0)                                     # pad lanes stay 0
    h = jnp.dot(h.astype(jnp.bfloat16), w3_ref[...],
                preferred_element_type=jnp.float32) + b3_ref[...]
    dna = jax.nn.sigmoid(h)
    lane = lax.broadcasted_iota(jnp.int32, (1, PAD_OUT), 1)
    dna = jnp.where(lane < DNA_DIM, dna, 0.0)   # pad lanes exactly 0 (no -1e30 trick)
    dna_ref[...] = dna
    # matches F.cosine_similarity's eps=1e-8 norm clamp
    ss = jnp.sum(dna * dna, axis=-1, keepdims=True)
    dnn = dna * lax.rsqrt(jnp.maximum(ss, 1e-16))
    dnn_ref[...] = dnn.astype(jnp.bfloat16)


@functools.lru_cache(maxsize=None)
def _dna_call(rows_pad):
    grid = (rows_pad // TILE_M,)
    return pl.pallas_call(
        _dna_kernel,
        grid=grid,
        in_specs=[
            pl.BlockSpec((TILE_M, IN_DIM), lambda i: (i, 0)),     # x (bf16)
            pl.BlockSpec((IN_DIM, H1), lambda i: (0, 0)),         # w1
            pl.BlockSpec((1, H1), lambda i: (0, 0)),              # b1
            pl.BlockSpec((H1, H2P), lambda i: (0, 0)),            # w2 (padded)
            pl.BlockSpec((1, H2P), lambda i: (0, 0)),             # b2 (padded)
            pl.BlockSpec((H2P, PAD_OUT), lambda i: (0, 0)),       # w3 (padded)
            pl.BlockSpec((1, PAD_OUT), lambda i: (0, 0)),         # b3 (padded)
        ],
        out_specs=(pl.BlockSpec((TILE_M, PAD_OUT), lambda i: (i, 0)),
                   pl.BlockSpec((TILE_M, PAD_OUT), lambda i: (i, 0))),
        out_shape=(jax.ShapeDtypeStruct((rows_pad, PAD_OUT), jnp.float32),
                   jax.ShapeDtypeStruct((rows_pad, PAD_OUT), jnp.bfloat16)),
        compiler_params=pltpu.CompilerParams(dimension_semantics=("parallel",)),
    )


# ----------------------------------------------------------------------------
# Kernel B: cosine matrix tile.  rows-tile (T,128) x cols (C,128), both already
# L2-normalised bf16; contract dim1-with-dim1 (no explicit transpose).
# bf16 MXU, f32 accumulation: ~1e-3 relative score shift vs f32 reference.
# ----------------------------------------------------------------------------
_COS_DIMS = (((1,), (1,)), ((), ()))


def _cos_kernel(rows_ref, cols_ref, cos_ref):
    cos_ref[...] = lax.dot_general(rows_ref[...], cols_ref[...], _COS_DIMS,
                                   preferred_element_type=jnp.float32)


@functools.lru_cache(maxsize=None)
def _cos_call(rows_pad, cols_pad):
    grid = (rows_pad // TILE_M,)
    return pl.pallas_call(
        _cos_kernel,
        grid=grid,
        in_specs=[
            pl.BlockSpec((TILE_M, PAD_OUT), lambda i: (i, 0)),    # row tile
            pl.BlockSpec((cols_pad, PAD_OUT), lambda i: (0, 0)),  # all columns
        ],
        out_specs=pl.BlockSpec((TILE_M, cols_pad), lambda i: (i, 0)),
        out_shape=jax.ShapeDtypeStruct((rows_pad, cols_pad), jnp.float32),
        compiler_params=pltpu.CompilerParams(dimension_semantics=("parallel",)),
    )


# ----------------------------------------------------------------------------
# Host-side module mirroring the PyTorch `World` / `Spices`
# ----------------------------------------------------------------------------
class Spices:
    def __init__(self, x):
        self.data = jnp.asarray(x, jnp.float32)   # (N, 16, 16)
        self.score = []                           # python floats
        self.dnas = []                            # numpy (32,) f32 rows
        self.leader = None
        self.dnn = None                           # device-resident normalised DNA (N,128) bf16


class World:
    def __init__(self, x1, x2, x3, hell_reborn=False):
        # deterministic Linear params (torch-style uniform(-1/sqrt(fan_in), +..))
        keys = jax.random.split(jax.random.PRNGKey(1234), 6)

        def linear(kw, kb, fan_in, fan_out):
            bound = 1.0 / math.sqrt(fan_in)
            w = jax.random.uniform(kw, (fan_in, fan_out), jnp.float32, -bound, bound)
            b = jax.random.uniform(kb, (1, fan_out), jnp.float32, -bound, bound)
            return w, b

        w1, b1 = linear(keys[0], keys[1], IN_DIM, H1)
        w2, b2 = linear(keys[2], keys[3], H1, H2)
        w3, b3 = linear(keys[4], keys[5], H2, DNA_DIM)

        # fc2 padded to 128 outputs (zero cols / zero bias -> relu(0)=0, and the
        # matching fc3 rows are zero, so padding is numerically inert).
        w2p = jnp.zeros((H1, H2P), jnp.float32).at[:, :H2].set(w2)
        b2p = jnp.zeros((1, H2P), jnp.float32).at[:, :H2].set(b2)
        # fc3 padded to 128 outputs; pad lanes masked to 0 inside the kernel.
        w3p = jnp.zeros((H2P, PAD_OUT), jnp.float32).at[:H2, :DNA_DIM].set(w3)
        b3p = jnp.zeros((1, PAD_OUT), jnp.float32).at[:, :DNA_DIM].set(b3)

        # bf16 weights (MXU), f32 biases (elementwise math stays f32)
        self._weights = (w1.astype(jnp.bfloat16), b1,
                         w2p.astype(jnp.bfloat16), b2p,
                         w3p.astype(jnp.bfloat16), b3p)

        self.spices = [Spices(x1), Spices(x2), Spices(x3)]
        self.hell = []
        self.hell_reborn = hell_reborn
        self._cos_cache = None   # (cos_np, offsets, sizes) set by representing()
        # TODO(synk): F.dropout in training mode is stochastic; eval-mode
        # semantics (dropout = identity) are used here.

    # -- Pallas-backed compute ------------------------------------------------
    def _dna_launch(self, members_list):
        """Single gridded DNA launch over the concatenation of members_list.
        Returns (dna_dev (rp,128) f32, dnn_dev (rp,128) bf16, offs, sizes,
        total, rows_pad)."""
        sizes = [int(m.shape[0]) for m in members_list]
        total = sum(sizes)
        rows_pad = _bucket(total)
        flat = jnp.concatenate(
            [jnp.reshape(m, (int(m.shape[0]), -1)) for m in members_list],
            axis=0).astype(jnp.bfloat16)                     # bf16 x upload
        dna_dev, dnn_dev = _dna_call(rows_pad)(_pad_rows(flat, rows_pad),
                                               *self._weights)
        offs = np.cumsum([0] + sizes)[:-1]
        return dna_dev, dnn_dev, offs, sizes, total, rows_pad

    def to_dna_batch(self, members):
        """members: (B, 16, 16) -> DNA matrix (B, 32) numpy (DNA-only kernel)."""
        members = jnp.asarray(members, jnp.float32)
        b = int(members.shape[0])
        rows_pad = _bucket(b)
        flat = jnp.reshape(members, (b, -1)).astype(jnp.bfloat16)
        dna_dev, _ = _dna_call(rows_pad)(_pad_rows(flat, rows_pad), *self._weights)
        return jax.device_get(dna_dev[:b, :DNA_DIM])

    def to_dna(self, member):
        return self.to_dna_batch(jnp.asarray(member)[None])[0]

    # -- evolutionary loop (host control flow, kernels for the math) ----------
    def forward(self):
        # NOTE: the reference requires an external init(); done lazily here so
        # forward() is runnable on its own.
        if self.spices[0].leader is None:
            self.init()
        for _ in range(3):
            self.main_procedure()
        return self.get_limit()

    def init(self):
        self._cos_cache = None
        dna_dev, dnn_dev, offs, sizes, total, _ = self._dna_launch(
            [x.data for x in self.spices])
        dna_np = jax.device_get(dna_dev[:total, :DNA_DIM])     # one host sync
        for s, x in enumerate(self.spices):
            off = int(offs[s])
            for i in range(sizes[s]):
                x.dnas.append(dna_np[off + i])
                x.score.append(100.0)
            x.dnn = dnn_dev[off:off + sizes[s]]
            x.leader = x.data[0]

    def main_procedure(self):
        self.representing()
        self.score()
        self.ageing()
        self.die()
        self.mate()
        self.voting()

    def representing(self):
        dna_dev, dnn_dev, offs, sizes, total, rows_pad = self._dna_launch(
            [x.data for x in self.spices])
        cos_dev = _cos_call(rows_pad, rows_pad)(dnn_dev, dnn_dev)
        # slice to the valid block on device -> small D2H, single host sync
        dna_np, cos_np = jax.device_get(
            (dna_dev[:total, :DNA_DIM], cos_dev[:total, :total]))
        for s, x in enumerate(self.spices):
            off = int(offs[s])
            for i in range(sizes[s]):
                x.dnas[i] = dna_np[off + i]
            x.dnn = dnn_dev[off:off + sizes[s]]     # device-resident for mate()
        # cache the self-cosine matrix: score() (next call) reuses it
        self._cos_cache = (cos_np, offs, sizes)

    def score(self):
        sizes_now = [len(x.dnas) for x in self.spices]
        if self._cos_cache is not None and list(self._cos_cache[2]) == sizes_now:
            cos_np, offs, _ = self._cos_cache
        else:
            # Standalone fallback (never hit inside forward()): host cosine on
            # the stored dnas.  # TODO(synk): only the fused forward() path runs
            # this through Pallas.
            mats = [np.stack(x.dnas) for x in self.spices if len(x.dnas) > 0]
            dna_all = (np.concatenate(mats, axis=0) if mats
                       else np.zeros((0, DNA_DIM), np.float32))
            dn = dna_all / np.maximum(
                np.linalg.norm(dna_all, axis=1, keepdims=True), 1e-8)
            cos_np = dn @ dn.T
            offs = np.cumsum([0] + sizes_now)[:-1]
        for s, x in enumerate(self.spices):
            off = int(offs[s])
            n = len(x.dnas)
            if n == 0:
                continue
            refs = np.asarray([random.choices(range(n), k=10) for _ in range(n)],
                              dtype=np.int64)                       # host-sampled
            block = cos_np[off:off + n, off:off + n]
            vals = block[np.arange(n)[:, None], refs].sum(axis=1)   # one gather
            for i in range(n):
                x.score[i] = float(vals[i])

    def ageing(self):
        for x in self.spices:
            for i in range(len(x.score)):
                x.score[i] = x.score[i] * 1.05

    def die(self):
        self._cos_cache = None
        for x in self.spices:
            mean_score = float(np.mean(np.asarray(x.score, dtype=np.float32)))
            die_idx = [i for i, s in enumerate(x.score) if s > mean_score]
            if self.hell_reborn:
                hell_idx = random.sample(die_idx, k=len(die_idx) // 4 + 1)
                for i in hell_idx:
                    self.hell.append(x.data[i])
            if len(die_idx) > 0:
                dead = set(die_idx)
                keep = [i for i in range(len(x.score)) if i not in dead]
                x.score = [x.score[i] for i in keep]
                x.dnas = [x.dnas[i] for i in keep]
                keep_idx = jnp.asarray(np.asarray(keep, dtype=np.int32))
                x.data = x.data[keep_idx]
                if x.dnn is not None:
                    x.dnn = x.dnn[keep_idx]

    def mate(self):
        self._cos_cache = None
        spices = self.spices
        leaders = [x.leader for x in spices]
        hell_stack = (jnp.stack(self.hell)
                      if (self.hell_reborn and len(self.hell) > 0) else None)

        # children per spice: regular (even-indexed parents) then hell (folded
        # into the SAME launch instead of extra per-spice launches)
        reg_children, hel_children, child_blocks = [], [], []
        for s, x in enumerate(spices):
            reg = leaders[s] * 0.8 + x.data[::2] * 0.2
            reg_children.append(reg)
            if hell_stack is not None:
                hel = leaders[s] * 0.8 + hell_stack * 0.2
                hel_children.append(hel)
                child_blocks.append(jnp.concatenate([reg, hel], axis=0))
            else:
                hel_children.append(None)
                child_blocks.append(reg)

        reg_counts = [int(c.shape[0]) for c in reg_children]
        hel_counts = [int(h.shape[0]) if h is not None else 0 for h in hel_children]
        child_counts = [r + h for r, h in zip(reg_counts, hel_counts)]
        exist_counts = [len(x.dnas) for x in spices]
        tc = sum(child_counts)
        te = sum(exist_counts)

        rows_pad = _bucket(tc)      # child-row padding
        ce = _bucket(te)            # exist-column padding (decoupled from rows)

        # one fused DNA launch for ALL spices' children (regular + hell)
        cdna_dev, cdnn_dev, ch_offs, _, _, _ = self._dna_launch(child_blocks)

        # existing-DNA columns: reuse the device-resident normalised DNA from
        # representing() (no host rebuild / upload)
        if te > 0:
            exist_dnn = jnp.concatenate(
                [x.dnn for x in spices if len(x.dnas) > 0], axis=0)
            exist_dnn = _pad_rows(exist_dnn, ce)
        else:
            exist_dnn = jnp.zeros((ce, PAD_OUT), jnp.bfloat16)
        cols = jnp.concatenate([exist_dnn, cdnn_dev], axis=0)   # (ce+rows_pad,128)

        cos_dev = _cos_call(rows_pad, ce + rows_pad)(cdnn_dev, cols)
        # slice to the valid (children x [exist | children]) block before D2H
        cos_valid = jnp.concatenate(
            [cos_dev[:tc, :te], cos_dev[:tc, ce:ce + tc]], axis=1)
        child_dna, cos_np = jax.device_get(
            (cdna_dev[:tc, :DNA_DIM], cos_valid))                # one host sync

        ex_offs = np.cumsum([0] + exist_counts)[:-1]

        for s, x in enumerate(spices):
            m = exist_counts[s]
            base_row = int(ch_offs[s])
            base_col = int(ex_offs[s])
            kreg, khel = reg_counts[s], hel_counts[s]

            def add_child(row, n_dnas_before):
                x.dnas.append(child_dna[row, :])
                # score_x: 10 refs from the dnas present at append time
                refs = random.choices(range(n_dnas_before + 1), k=10)
                cols_idx = np.asarray(
                    [(base_col + r) if r < m else (te + base_row + (r - m))
                     for r in refs], dtype=np.int64)
                x.score.append(float(cos_np[row, cols_idx].sum()))

            for c in range(kreg):                       # regular children
                add_child(base_row + c, m + c)
            x.data = jnp.concatenate([x.data, reg_children[s]], axis=0)
            if khel > 0:                                # hell children
                for c in range(khel):
                    add_child(base_row + kreg + c, m + kreg + c)
                x.data = jnp.concatenate([x.data, hel_children[s]], axis=0)
            # keep device-resident normalised DNA aligned with x.dnas / x.data
            if x.dnn is not None:
                x.dnn = jnp.concatenate(
                    [x.dnn, cdnn_dev[base_row:base_row + kreg + khel]], axis=0)
        self.hell = []

    def voting(self):
        for x in self.spices:
            min_score = 1e20
            tmp_idx = None
            for i, s in enumerate(x.score):
                if s < min_score:        # NOTE: min_score never updated — bug
                    tmp_idx = i          # preserved from the reference.
            x.leader = x.data[tmp_idx] if tmp_idx is not None else None

    def get_limit(self):
        limit = 0.0
        for x in self.spices:
            limit += min(x.score)
        return jnp.asarray(limit, jnp.float32)


if __name__ == "__main__":
    random.seed(0)
    key = jax.random.PRNGKey(0)
    k1, k2, k3 = jax.random.split(key, 3)
    x1 = jax.random.normal(k1, (6, 16, 16), jnp.float32)
    x2 = jax.random.normal(k2, (5, 16, 16), jnp.float32)
    x3 = jax.random.normal(k3, (4, 16, 16), jnp.float32)

    world = World(x1, x2, x3, hell_reborn=False)
    out = world.forward()
    jax.block_until_ready(out)
    print("KERNEL_OK")
</pallas_src>

<mosaic_0001>
module attributes {stable_mosaic.version = 11 : i64} {
  func.func @_dna_kernel(%arg0: i32, %arg1: memref<128x256xbf16, #tpu.memory_space<vmem>>, %arg2: memref<256x128xbf16, #tpu.memory_space<vmem>>, %arg3: memref<1x128xf32, #tpu.memory_space<vmem>>, %arg4: memref<128x128xbf16, #tpu.memory_space<vmem>>, %arg5: memref<1x128xf32, #tpu.memory_space<vmem>>, %arg6: memref<128x128xbf16, #tpu.memory_space<vmem>>, %arg7: memref<1x128xf32, #tpu.memory_space<vmem>>, %arg8: memref<128x128xf32, #tpu.memory_space<vmem>>, %arg9: memref<128x128xbf16, #tpu.memory_space<vmem>>) attributes {dimension_semantics = [#tpu.dimension_semantics<parallel>], iteration_bounds = array<i64: 1>, scalar_prefetch = 0 : i64, scratch_operands = 0 : i64, tpu.core_type = #tpu.core_type<tc>, window_params = [{transform_indices = @transform_0, window_bounds = array<i64: 128, 256>}, {pipeline_mode = #tpu.pipeline_mode<synchronous>, transform_indices = @transform_1, window_bounds = array<i64: 256, 128>}, {pipeline_mode = #tpu.pipeline_mode<synchronous>, transform_indices = @transform_2, window_bounds = array<i64: 1, 128>}, {pipeline_mode = #tpu.pipeline_mode<synchronous>, transform_indices = @transform_3, window_bounds = array<i64: 128, 128>}, {pipeline_mode = #tpu.pipeline_mode<synchronous>, transform_indices = @transform_4, window_bounds = array<i64: 1, 128>}, {pipeline_mode = #tpu.pipeline_mode<synchronous>, transform_indices = @transform_5, window_bounds = array<i64: 128, 128>}, {pipeline_mode = #tpu.pipeline_mode<synchronous>, transform_indices = @transform_6, window_bounds = array<i64: 1, 128>}, {transform_indices = @transform_7, window_bounds = array<i64: 128, 128>}, {transform_indices = @transform_8, window_bounds = array<i64: 128, 128>}]} {
    %c0 = arith.constant 0 : index
    %c0_0 = arith.constant 0 : index
    %0 = vector.load %arg1[%c0, %c0_0] : memref<128x256xbf16, #tpu.memory_space<vmem>>, vector<128x256xbf16>
    %c0_1 = arith.constant 0 : index
    %c0_2 = arith.constant 0 : index
    %1 = vector.load %arg2[%c0_1, %c0_2] : memref<256x128xbf16, #tpu.memory_space<vmem>>, vector<256x128xbf16>
    %cst = arith.constant dense<0.000000e+00> : vector<128x128xf32>
    %2 = tpu.matmul %0, %1, %cst {dimension_numbers = #tpu.dot_dimension_numbers<[1], [0], [0], [1], [0, 0, 1, 1], [], []>} : vector<128x256xbf16>, vector<256x128xbf16>, vector<128x128xf32> -> vector<128x128xf32>
    %c0_3 = arith.constant 0 : index
    %c0_4 = arith.constant 0 : index
    %3 = vector.load %arg3[%c0_3, %c0_4] : memref<1x128xf32, #tpu.memory_space<vmem>>, vector<1x128xf32>
    %4 = vector.broadcast %3 : vector<1x128xf32> to vector<128x128xf32>
    %5 = arith.addf %2, %4 : vector<128x128xf32>
    %cst_5 = arith.constant 0.000000e+00 : f32
    %6 = vector.broadcast %cst_5 : f32 to vector<128x128xf32>
    %7 = arith.maximumf %5, %6 : vector<128x128xf32>
    %8 = arith.truncf %7 : vector<128x128xf32> to vector<128x128xbf16>
    %c0_6 = arith.constant 0 : index
    %c0_7 = arith.constant 0 : index
    %9 = vector.load %arg4[%c0_6, %c0_7] : memref<128x128xbf16, #tpu.memory_space<vmem>>, vector<128x128xbf16>
    %cst_8 = arith.constant dense<0.000000e+00> : vector<128x128xf32>
    %10 = tpu.matmul %8, %9, %cst_8 {dimension_numbers = #tpu.dot_dimension_numbers<[1], [0], [0], [1], [0, 0, 1, 1], [], []>} : vector<128x128xbf16>, vector<128x128xbf16>, vector<128x128xf32> -> vector<128x128xf32>
    %c0_9 = arith.constant 0 : index
    %c0_10 = arith.constant 0 : index
    %11 = vector.load %arg5[%c0_9, %c0_10] : memref<1x128xf32, #tpu.memory_space<vmem>>, vector<1x128xf32>
    %12 = vector.broadcast %11 : vector<1x128xf32> to vector<128x128xf32>
    %13 = arith.addf %10, %12 : vector<128x128xf32>
    %cst_11 = arith.constant 0.000000e+00 : f32
    %14 = vector.broadcast %cst_11 : f32 to vector<128x128xf32>
    %15 = arith.maximumf %13, %14 : vector<128x128xf32>
    %16 = arith.truncf %15 : vector<128x128xf32> to vector<128x128xbf16>
    %c0_12 = arith.constant 0 : index
    %c0_13 = arith.constant 0 : index
    %17 = vector.load %arg6[%c0_12, %c0_13] : memref<128x128xbf16, #tpu.memory_space<vmem>>, vector<128x128xbf16>
    %cst_14 = arith.constant dense<0.000000e+00> : vector<128x128xf32>
    %18 = tpu.matmul %16, %17, %cst_14 {dimension_numbers = #tpu.dot_dimension_numbers<[1], [0], [0], [1], [0, 0, 1, 1], [], []>} : vector<128x128xbf16>, vector<128x128xbf16>, vector<128x128xf32> -> vector<128x128xf32>
    %c0_15 = arith.constant 0 : index
    %c0_16 = arith.constant 0 : index
    %19 = vector.load %arg7[%c0_15, %c0_16] : memref<1x128xf32, #tpu.memory_space<vmem>>, vector<1x128xf32>
    %20 = vector.broadcast %19 : vector<1x128xf32> to vector<128x128xf32>
    %21 = arith.addf %18, %20 : vector<128x128xf32>
    %22 = arith.negf %21 : vector<128x128xf32>
    %23 = math.exp %22 : vector<128x128xf32>
    %cst_17 = arith.constant 1.000000e+00 : f32
    %24 = vector.broadcast %cst_17 : f32 to vector<128x128xf32>
    %25 = arith.addf %24, %23 : vector<128x128xf32>
    %26 = arith.divf %24, %25 : vector<128x128xf32>
    %27 = tpu.iota {dimensions = array<i32: 1>} : vector<1x128xi32>
    %c32_i32 = arith.constant 32 : i32
    %28 = vector.broadcast %c32_i32 : i32 to vector<1x128xi32>
    %29 = arith.cmpi slt, %27, %28 : vector<1x128xi32>
    %cst_18 = arith.constant 0.000000e+00 : f32
    %30 = vector.shape_cast %29 : vector<1x128xi1> to vector<1x128xi1>
    %31 = vector.broadcast %30 : vector<1x128xi1> to vector<128x128xi1>
    %32 = vector.broadcast %cst_18 : f32 to vector<128x128xf32>
    %33 = arith.select %31, %26, %32 : vector<128x128xi1>, vector<128x128xf32>
    %c0_19 = arith.constant 0 : index
    %c0_20 = arith.constant 0 : index
    %34 = vector.load %arg8[%c0_19, %c0_20] : memref<128x128xf32, #tpu.memory_space<vmem>>, vector<128x128xf32>
    tpu.vector_store %arg8[%c0_19, %c0_20], %33 {strides = array<i32>} : memref<128x128xf32, #tpu.memory_space<vmem>>, vector<128x128xf32>,
    %35 = arith.mulf %33, %33 : vector<128x128xf32>
    %cst_21 = arith.constant dense<0.000000e+00> : vector<128xf32>
    %36 = vector.multi_reduction <add>, %35, %cst_21 [1] : vector<128x128xf32> to vector<128xf32>
    %37 = vector.shape_cast %36 : vector<128xf32> to vector<128x1xf32>
    %cst_22 = arith.constant 1.000000e-16 : f32
    %38 = vector.broadcast %cst_22 : f32 to vector<128x1xf32>
    %39 = arith.maximumf %37, %38 : vector<128x1xf32>
    %40 = math.rsqrt %39 : vector<128x1xf32>
    %41 = vector.broadcast %40 : vector<128x1xf32> to vector<128x128xf32>
    %42 = arith.mulf %33, %41 : vector<128x128xf32>
    %43 = arith.truncf %42 : vector<128x128xf32> to vector<128x128xbf16>
    %c0_23 = arith.constant 0 : index
    %c0_24 = arith.constant 0 : index
    %44 = vector.load %arg9[%c0_23, %c0_24] : memref<128x128xbf16, #tpu.memory_space<vmem>>, vector<128x128xbf16>
    tpu.vector_store %arg9[%c0_23, %c0_24], %43 {strides = array<i32>} : memref<128x128xbf16, #tpu.memory_space<vmem>>, vector<128x128xbf16>,
    return
  }
  func.func @transform_0(%arg0: i32) -> (i32, i32) {
    %c0_i32 = arith.constant 0 : i32
    %c0_i32_0 = arith.constant 0 : i32
    return %arg0, %c0_i32 : i32, i32
  }
  func.func @transform_1(%arg0: i32) -> (i32, i32) {
    %c0_i32 = arith.constant 0 : i32
    %c0_i32_0 = arith.constant 0 : i32
    %c0_i32_1 = arith.constant 0 : i32
    return %c0_i32, %c0_i32_0 : i32, i32
  }
  func.func @transform_2(%arg0: i32) -> (i32, i32) {
    %c0_i32 = arith.constant 0 : i32
    %c0_i32_0 = arith.constant 0 : i32
    %c0_i32_1 = arith.constant 0 : i32
    return %c0_i32, %c0_i32_0 : i32, i32
  }
  func.func @transform_3(%arg0: i32) -> (i32, i32) {
    %c0_i32 = arith.constant 0 : i32
    %c0_i32_0 = arith.constant 0 : i32
    %c0_i32_1 = arith.constant 0 : i32
    return %c0_i32, %c0_i32_0 : i32, i32
  }
  func.func @transform_4(%arg0: i32) -> (i32, i32) {
    %c0_i32 = arith.constant 0 : i32
    %c0_i32_0 = arith.constant 0 : i32
    %c0_i32_1 = arith.constant 0 : i32
    return %c0_i32, %c0_i32_0 : i32, i32
  }
  func.func @transform_5(%arg0: i32) -> (i32, i32) {
    %c0_i32 = arith.constant 0 : i32
    %c0_i32_0 = arith.constant 0 : i32
    %c0_i32_1 = arith.constant 0 : i32
    return %c0_i32, %c0_i32_0 : i32, i32
  }
  func.func @transform_6(%arg0: i32) -> (i32, i32) {
    %c0_i32 = arith.constant 0 : i32
    %c0_i32_0 = arith.constant 0 : i32
    %c0_i32_1 = arith.constant 0 : i32
    return %c0_i32, %c0_i32_0 : i32, i32
  }
  func.func @transform_7(%arg0: i32) -> (i32, i32) {
    %c0_i32 = arith.constant 0 : i32
    %c0_i32_0 = arith.constant 0 : i32
    return %arg0, %c0_i32 : i32, i32
  }
  func.func @transform_8(%arg0: i32) -> (i32, i32) {
    %c0_i32 = arith.constant 0 : i32
    %c0_i32_0 = arith.constant 0 : i32
    return %arg0, %c0_i32 : i32, i32
  }
}

</mosaic_0001>

<bundles_post_ra>
// kernel: tpu_custom_call.1
= control target key start
LH: loop header
LB: loop body
LE: loop exit
PB: predicated region body
PF: predicated region fallthrough
CT: control target
= control target key end

     0   :  { %14 = vsyncpa [#allocation3], 0  ;;  %s2186_s0 = inlined_call_operand.hbm [shape: bf16[128,256], index: 0, kind: input, shape index: {}]   ;;  %s2187_s1 = inlined_call_operand.hbm [shape: bf16[256,128], index: 1, kind: input, shape index: {}]   ;;  %s2188_s2 = inlined_call_operand.vmem [shape: f32[1,128], index: 2, kind: input, shape index: {}]   ;;  %s2189_s3 = inlined_call_operand.hbm [shape: bf16[128,128], index: 3, kind: input, shape index: {}]   ;;  %s2190_s4 = inlined_call_operand.vmem [shape: f32[1,128], index: 4, kind: input, shape index: {}]   ;;  %s2191_s5 = inlined_call_operand.hbm [shape: bf16[128,128], index: 5, kind: input, shape index: {}]   ;;  %s2192_s6 = inlined_call_operand.vmem [shape: f32[1,128], index: 6, kind: input, shape index: {}]   ;;  %s2193_s7 = inlined_call_operand.hbm [shape: f32[128,128], index: 7, kind: output, shape index: {0}]   ;;  %s2194_s8 = inlined_call_operand.hbm [shape: bf16[128,128], index: 8, kind: output, shape index: {1}]  }
   0x1   :  { %15 = vsyncpa [#allocation6], 0 }
   0x2   :  { %16 = vsyncpa [#allocation9], 0 }
   0x3   :  { %17 = vsyncpa [#allocation4], 0  ;;  %s36_s29 = sshll.u32 %s2187_s1, 4  ;;  %s37_s29 = int_to_ptr.hbm [resolvable:$true] %s36_s29 }
   0x4   :  { %18 = vsyncpa [#allocation12], 0  ;;  %s1919_s30 = smov [#allocation5]   ;;  %s23_s12 = sshll.u32 %s2186_s0, 4  ;;  %s24_s12 = int_to_ptr.hbm [resolvable:$true] %s23_s12 }
   0x5   :  { %s38_s9 = sshll.u32 %s1919_s30, 4  ;;  %s1920_s13 = smov 64   ;;  %s39_s9 = int_to_ptr.vmem [resolvable:$true] %s38_s9 }
   0x6   :  { %s1921_s14 = smov 4   ;;  %s1922_s15 = smov [#allocation2]  }
   0x7   :  { %44 = dma.hbm_to_vmem [thread:$0]  %s37_s29, 2048, %s39_s9, [#allocation6], %s1920_s13, %s1920_s13, %s1921_s14  }
   0x8   :  { %s25_s16 = sshll.u32 %s1922_s15, 4  ;;  %s1923_s1 = smov 128   ;;  %s26_s16 = int_to_ptr.vmem [resolvable:$true] %s25_s16 }
   0x9   :  { %s1924_s17 = smov 8   ;;  %s51_s0 = sshll.u32 %s2189_s3, 4  ;;  %s52_s0 = int_to_ptr.hbm [resolvable:$true] %s51_s0 }
   0xa   :  { %31 = dma.hbm_to_vmem [thread:$0]  %s24_s12, 2048, %s26_s16, [#allocation3], %s1923_s1, %s1923_s1, %s1924_s17  }
   0xb   :  { %s1925_s20 = smov [#allocation7]   ;;  %s66_s24 = sshll.u32 %s2191_s5, 4  ;;  %s67_s24 = int_to_ptr.hbm [resolvable:$true] %s66_s24 }
   0xc   :  { %s53_s21 = sshll.u32 %s1925_s20, 4  ;;  %s1926_s25 = smov [#allocation8]   ;;  %s54_s21 = int_to_ptr.vmem [resolvable:$true] %s53_s21 }
   0xd   :  { %59 = dma.hbm_to_vmem [thread:$0]  %s52_s0, 1024, %s54_s21, [#allocation6], %s1920_s13, %s1920_s13, %s1921_s14  }
   0xe   :  { %s68_s26 = sshll.u32 %s1926_s25, 4  ;;  %s69_s26 = int_to_ptr.vmem [resolvable:$true] %s68_s26 }
   0xf   :  { %74 = dma.hbm_to_vmem [thread:$0]  %s67_s24, 1024, %s69_s26, [#allocation9], %s1920_s13, %s1920_s13, %s1921_s14  }
  0x10   :  { %1909 = dma.done.wait [#allocation3], 2048  }
  0x11   :  { %1910 = vsyncadd [#allocation3], 4294965248 }
  0x12   :  { %1911 = dma.done.wait [#allocation6], 3072  }
  0x13   :  { %1912 = vsyncadd [#allocation6], 4294964224 }
  0x14   :  { %1913 = dma.done.wait [#allocation9], 1024  }
  0x15   :  { %1914 = vsyncadd [#allocation9], 4294966272  ;;  %v1584_v0 = vld [vmem:[#allocation5 + $0x38] sm:$0xff]  ;;  %v1583_v2 = vld [vmem:[#allocation5 + $0x30] sm:$0xff]  ;;  %s1320_s10 = sshll.u32 %s2193_s7, 4  ;;  %s1928_s7 = smov [#allocation11]   ;;  %s1321_s10 = int_to_ptr.hbm [resolvable:$true] %s1320_s10 }
  0x16   :  { %v1592_v1 = vld [vmem:[#allocation5 + $0x78] sm:$0xff]  ;;  %321 = vmatpush.bf16.msra.mxu0 %v1584_v0  ;;  %v1591_v3 = vld [vmem:[#allocation5 + $0x70] sm:$0xff]  ;;  %v1582_v4 = vld [vmem:[#allocation5 + $0x28] sm:$0xff]  ;;  %s1331_s11 = sshll.u32 %s1928_s7, 4  ;;  %s1333_s16 = sshll.u32 %s2194_s8, 4  ;;  %s1332_s11 = int_to_ptr.vmem [resolvable:$true] %s1331_s11  ;;  %s1334_s16 = int_to_ptr.hbm [resolvable:$true] %s1333_s16 }
  0x17   :  { %370 = vmatpush.bf16.msra.mxu1 %v1592_v1  ;;  %v1590_v5 = vld [vmem:[#allocation5 + $0x68] sm:$0xff]  ;;  %v1581_v6 = vld [vmem:[#allocation5 + $0x20] sm:$0xff]  ;;  %v1580_v8 = vld [vmem:[#allocation5 + $0x18] sm:$0xff] }
  0x18   :  { %v1589_v7 = vld [vmem:[#allocation5 + $0x60] sm:$0xff]  ;;  %v1588_v9 = vld [vmem:[#allocation5 + $0x58] sm:$0xff]  ;;  %v1579_v10 = vld [vmem:[#allocation5 + $0x10] sm:$0xff] }
  0x19   :  { %v1587_v11 = vld [vmem:[#allocation5 + $0x50] sm:$0xff]  ;;  %v1578_v12 = vld [vmem:[#allocation5 + $0x8] sm:$0xff]  ;;  %v1577_v14 = vld [vmem:[#allocation5] sm:$0xff] }
  0x1a   :  { %322 = vmatpush.bf16.msra.mxu0 %v1583_v2  ;;  %v1586_v13 = vld [vmem:[#allocation5 + $0x48] sm:$0xff]  ;;  %v1585_v15 = vld [vmem:[#allocation5 + $0x40] sm:$0xff]  ;;  %v1363_v22 = vld [vmem:[#allocation2 + $0x10] sm:$0xf] }
  0x1b   :  { %371 = vmatpush.bf16.msra.mxu1 %v1591_v3  ;;  %v1355_v16 = vld [vmem:[#allocation2] sm:$0xf]  ;;  %v1562_v17 = vld [vmem:[#allocation2 + $0x4] sm:$0xf0]  ;;  %v1561_v18 = vld [vmem:[#allocation2 + $0x4] sm:$0xf] }
  0x1c   :  { %v1357_v19 = vld [vmem:[#allocation2 + $0x8] sm:$0xf0]  ;;  %v1356_v20 = vor.u32 %v1562_v17, %v1355_v16  ;;  %v1564_v23 = vld [vmem:[#allocation2 + $0x14] sm:$0xf0]  ;;  %v1563_v24 = vld [vmem:[#allocation2 + $0x14] sm:$0xf] }
  0x1d   :  { %v1360_v21 = vor.u32 %v1561_v18, %v1357_v19  ;;  %v1365_v25 = vld [vmem:[#allocation2 + $0x18] sm:$0xf0]  ;;  %v1364_v26 = vor.u32 %v1564_v23, %v1363_v22  ;;  %v1371_v28 = vld [vmem:[#allocation2 + $0x20] sm:$0xf]  ;;  %v1566_v29 = vld [vmem:[#allocation2 + $0x24] sm:$0xf0] }
  0x1e   :  { %323 = vmatpush.bf16.msra.mxu0 %v1582_v4  ;;  %v1368_v27 = vor.u32 %v1563_v24, %v1365_v25  ;;  %v1565_v30 = vld [vmem:[#allocation2 + $0x24] sm:$0xf]  ;;  %v1373_v31 = vld [vmem:[#allocation2 + $0x28] sm:$0xf0]  ;;  %v1372_v32 = vor.u32 %v1566_v29, %v1371_v28  ;;  %v1379_v34 = vld [vmem:[#allocation2 + $0x30] sm:$0xf] }
  0x1f   :  { %372 = vmatpush.bf16.msra.mxu1 %v1590_v5  ;;  %v1376_v33 = vor.u32 %v1565_v30, %v1373_v31  ;;  %v1568_v35 = vld [vmem:[#allocation2 + $0x34] sm:$0xf0]  ;;  %v1567_v36 = vld [vmem:[#allocation2 + $0x34] sm:$0xf]  ;;  %v1381_v37 = vld [vmem:[#allocation2 + $0x38] sm:$0xf0] }
  0x20   :  { %v1380_v38 = vor.u32 %v1568_v35, %v1379_v34  ;;  %v1384_v39 = vor.u32 %v1567_v36, %v1381_v37  ;;  %v1387_v40 = vld [vmem:[#allocation2 + $0x40] sm:$0xf]  ;;  %v1570_v41 = vld [vmem:[#allocation2 + $0x44] sm:$0xf0]  ;;  %v1569_v42 = vld [vmem:[#allocation2 + $0x44] sm:$0xf] }
  0x21   :  { %v1389_v43 = vld [vmem:[#allocation2 + $0x48] sm:$0xf0]  ;;  %v1388_v44 = vor.u32 %v1570_v41, %v1387_v40  ;;  %v1600_v46 = vld [vmem:[#allocation7 + $0x38] sm:$0xff]  ;;  %v1395_v47 = vld [vmem:[#allocation2 + $0x50] sm:$0xf] }
  0x22   :  { %324 = vmatpush.bf16.msra.mxu0 %v1581_v6  ;;  %v1392_v45 = vor.u32 %v1569_v42, %v1389_v43  ;;  %511 = vmatpush.bf16.msra.mxu2 %v1600_v46  ;;  %v1572_v48 = vld [vmem:[#allocation2 + $0x54] sm:$0xf0]  ;;  %v1571_v49 = vld [vmem:[#allocation2 + $0x54] sm:$0xf]  ;;  %v1397_v50 = vld [vmem:[#allocation2 + $0x58] sm:$0xf0] }
  0x23   :  { %373 = vmatpush.bf16.msra.mxu1 %v1589_v7  ;;  %v1396_v51 = vor.u32 %v1572_v48, %v1395_v47  ;;  %v1400_v52 = vor.u32 %v1571_v49, %v1397_v50  ;;  %v1599_v53 = vld [vmem:[#allocation7 + $0x30] sm:$0xff]  ;;  %v1598_v54 = vld [vmem:[#allocation7 + $0x28] sm:$0xff]  ;;  %v1597_v55 = vld [vmem:[#allocation7 + $0x20] sm:$0xff] }
  0x24   :  { %v1403_v56 = vld [vmem:[#allocation2 + $0x60] sm:$0xf]  ;;  %v1574_v57 = vld [vmem:[#allocation2 + $0x64] sm:$0xf0]  ;;  %v1573_v58 = vld [vmem:[#allocation2 + $0x64] sm:$0xf] }
  0x25   :  { %v1405_v59 = vld [vmem:[#allocation2 + $0x68] sm:$0xf0]  ;;  %v1404_v60 = vor.u32 %v1574_v57, %v1403_v56  ;;  %v1596_v62 = vld [vmem:[#allocation7 + $0x18] sm:$0xff]  ;;  %v1595_v63 = vld [vmem:[#allocation7 + $0x10] sm:$0xff] }
  0x26   :  { %325 = vmatpush.bf16.msra.mxu0 %v1580_v8  ;;  %512 = vmatpush.bf16.msra.mxu2 %v1599_v53  ;;  %v1408_v61 = vor.u32 %v1573_v58, %v1405_v59  ;;  %v1594_v0 = vld [vmem:[#allocation7 + $0x8] sm:$0xff]  ;;  %v1411_v1 = vld [vmem:[#allocation2 + $0x70] sm:$0xf]  ;;  %v1576_v2 = vld [vmem:[#allocation2 + $0x74] sm:$0xf0] }
  0x27   :  { %374 = vmatpush.bf16.msra.mxu1 %v1588_v9  ;;  %v1575_v3 = vld [vmem:[#allocation2 + $0x74] sm:$0xf]  ;;  %v1413_v4 = vld [vmem:[#allocation2 + $0x78] sm:$0xf0]  ;;  %v1593_v5 = vld [vmem:[#allocation7] sm:$0xff]  ;;  %v1412_v6 = vor.u32 %v1576_v2, %v1411_v1 }
  0x28   :  { %v1416_v7 = vor.u32 %v1575_v3, %v1413_v4 }
  0x2a   :  { %326 = vmatpush.bf16.msra.mxu0 %v1579_v10  ;;  %513 = vmatpush.bf16.msra.mxu2 %v1598_v54  ;;  %v2001_v10 = vld [vmem:[%s2188_s2] ss:$0 sm:$0xff] }
  0x2b   :  { %375 = vmatpush.bf16.msra.mxu1 %v1587_v11 }
  0x2e   :  { %327 = vmatpush.bf16.msra.mxu0 %v1578_v12  ;;  %514 = vmatpush.bf16.msra.mxu2 %v1597_v55 }
  0x2f   :  { %376 = vmatpush.bf16.msra.mxu1 %v1586_v13 }
  0x32   :  { %328 = vmatpush.bf16.msra.mxu0 %v1577_v14  ;;  %515 = vmatpush.bf16.msra.mxu2 %v1596_v62 }
  0x33   :  { %377 = vmatpush.bf16.msra.mxu1 %v1585_v15 }
  0x35   :  { %329 = vmatmul.bf16.vlgmr.msra.gmra.mxu0 %v1356_v20 }
  0x36   :  { %378 = vmatmul.bf16.vlgmr.msra.gmra.mxu1 %v1360_v21  ;;  %516 = vmatpush.bf16.msra.mxu2 %v1595_v63 }
  0x3a   :  { %517 = vmatpush.bf16.msra.mxu2 %v1594_v0 }
  0x3e   :  { %518 = vmatpush.bf16.msra.mxu2 %v1593_v5 }
  0x45   :  { %334 = vmatmul.bf16.gmra.mxu0 %v1364_v26 }
  0x46   :  { %383 = vmatmul.bf16.gmra.mxu1 %v1368_v27 }
  0x55   :  { %339 = vmatmul.bf16.gmra.mxu0 %v1372_v32 }
  0x56   :  { %388 = vmatmul.bf16.gmra.mxu1 %v1376_v33 }
  0x65   :  { %344 = vmatmul.bf16.gmra.mxu0 %v1380_v38 }
  0x66   :  { %393 = vmatmul.bf16.gmra.mxu1 %v1384_v39 }
  0x75   :  { %349 = vmatmul.bf16.gmra.mxu0 %v1388_v44 }
  0x76   :  { %398 = vmatmul.bf16.gmra.mxu1 %v1392_v45 }
  0x85   :  { %354 = vmatmul.bf16.gmra.mxu0 %v1396_v51 }
  0x86   :  { %403 = vmatmul.bf16.gmra.mxu1 %v1400_v52 }
  0x95   :  { %359 = vmatmul.bf16.gmra.mxu0 %v1404_v60 }
  0x96   :  { %408 = vmatmul.bf16.gmra.mxu1 %v1408_v61 }
  0xa5   :  { %364 = vmatmul.bf16.gmra.mxu0 %v1412_v6 }
  0xa6   :  { %413 = vmatmul.bf16.gmra.mxu1 %v1416_v7 }
  0xb2   :  { %v330_v8 = vpop.f32.mrf.mxu0 }
  0xb3   :  { %v379_v9 = vpop.f32.mrf.mxu1  ;;  %v331_v11 = vadd.f32 %v2001_v10, %v330_v8 }
  0xb5   :  { %v380_v14 = vadd.f32 %v379_v9, %v331_v11 }
  0xb7   :  { %v419_v17 = vmax.f32 %v380_v14, 0.0  ;;  %v1608_v14 = vld [vmem:[#allocation8 + $0x38] sm:$0xff] }
  0xb8   :  { %652 = vmatpush.bf16.msra.mxu3 %v1608_v14 }
  0xba   :  { %v332_v12 = vpop.f32.mrf.mxu0 }
  0xbb   :  { %v381_v13 = vpop.f32.mrf.mxu1  ;;  %v333_v15 = vadd.f32 %v2001_v10, %v332_v12 }
  0xbd   :  { %v382_v16 = vadd.f32 %v381_v13, %v333_v15  ;;  %v1607_v15 = vld [vmem:[#allocation8 + $0x30] sm:$0xff] }
  0xbe   :  { %653 = vmatpush.bf16.msra.mxu3 %v1607_v15 }
  0xbf   :  { %v420_v18 = vmax.f32 %v382_v16, 0.0 }
  0xc1   :  { %v435_v19 = vpack.c.bf16 %v420_v18, %v419_v17  ;;  %v1606_v17 = vld [vmem:[#allocation8 + $0x28] sm:$0xff] }
  0xc2   :  { %v335_v20 = vpop.f32.mrf.mxu0  ;;  %654 = vmatpush.bf16.msra.mxu3 %v1606_v17 }
  0xc3   :  { %v384_v21 = vpop.f32.mrf.mxu1  ;;  %519 = vmatmul.bf16.vlgmr.msra.gmra.mxu2 %v435_v19  ;;  %v336_v22 = vadd.f32 %v2001_v10, %v335_v20 }
  0xc5   :  { %v385_v25 = vadd.f32 %v384_v21, %v336_v22 }
  0xc7   :  { %v421_v28 = vmax.f32 %v385_v25, 0.0 }
  0xca   :  { %v337_v23 = vpop.f32.mrf.mxu0 }
  0xcb   :  { %v386_v24 = vpop.f32.mrf.mxu1  ;;  %v338_v26 = vadd.f32 %v2001_v10, %v337_v23  ;;  %v1605_v23 = vld [vmem:[#allocation8 + $0x20] sm:$0xff] }
  0xcc   :  { %655 = vmatpush.bf16.msra.mxu3 %v1605_v23 }
  0xcd   :  { %v387_v27 = vadd.f32 %v386_v24, %v338_v26 }
  0xcf   :  { %v422_v29 = vmax.f32 %v387_v27, 0.0 }
  0xd1   :  { %v436_v30 = vpack.c.bf16 %v422_v29, %v421_v28  ;;  %v1604_v29 = vld [vmem:[#allocation8 + $0x18] sm:$0xff] }
  0xd2   :  { %v340_v31 = vpop.f32.mrf.mxu0  ;;  %656 = vmatpush.bf16.msra.mxu3 %v1604_v29 }
  0xd3   :  { %v389_v32 = vpop.f32.mrf.mxu1  ;;  %524 = vmatmul.bf16.gmra.mxu2 %v436_v30  ;;  %v341_v33 = vadd.f32 %v2001_v10, %v340_v31  ;;  %v1603_v31 = vld [vmem:[#allocation8 + $0x10] sm:$0xff] }
  0xd5   :  { %v390_v36 = vadd.f32 %v389_v32, %v341_v33 }
  0xd6   :  { %657 = vmatpush.bf16.msra.mxu3 %v1603_v31 }
  0xd7   :  { %v423_v39 = vmax.f32 %v390_v36, 0.0  ;;  %v1602_v36 = vld [vmem:[#allocation8 + $0x8] sm:$0xff] }
  0xda   :  { %v342_v34 = vpop.f32.mrf.mxu0  ;;  %658 = vmatpush.bf16.msra.mxu3 %v1602_v36 }
  0xdb   :  { %v391_v35 = vpop.f32.mrf.mxu1  ;;  %v343_v37 = vadd.f32 %v2001_v10, %v342_v34 }
  0xdd   :  { %v392_v38 = vadd.f32 %v391_v35, %v343_v37 }
  0xdf   :  { %v424_v40 = vmax.f32 %v392_v38, 0.0 }
  0xe1   :  { %v437_v41 = vpack.c.bf16 %v424_v40, %v423_v39  ;;  %v1601_v40 = vld [vmem:[#allocation8] sm:$0xff] }
  0xe2   :  { %v345_v42 = vpop.f32.mrf.mxu0  ;;  %659 = vmatpush.bf16.msra.mxu3 %v1601_v40 }
  0xe3   :  { %v394_v43 = vpop.f32.mrf.mxu1  ;;  %529 = vmatmul.bf16.gmra.mxu2 %v437_v41  ;;  %v346_v44 = vadd.f32 %v2001_v10, %v345_v42 }
  0xe5   :  { %v395_v47 = vadd.f32 %v394_v43, %v346_v44  ;;  %v1667_v43 = vld [vmem:[%s2190_s4] ss:$0 sm:$0xff] }
  0xe7   :  { %v425_v50 = vmax.f32 %v395_v47, 0.0 }
  0xea   :  { %v347_v45 = vpop.f32.mrf.mxu0 }
  0xeb   :  { %v396_v46 = vpop.f32.mrf.mxu1  ;;  %v348_v48 = vadd.f32 %v2001_v10, %v347_v45 }
  0xed   :  { %v397_v49 = vadd.f32 %v396_v46, %v348_v48 }
  0xef   :  { %v426_v51 = vmax.f32 %v397_v49, 0.0 }
  0xf1   :  { %v438_v52 = vpack.c.bf16 %v426_v51, %v425_v50 }
  0xf2   :  { %v350_v53 = vpop.f32.mrf.mxu0 }
  0xf3   :  { %v399_v54 = vpop.f32.mrf.mxu1  ;;  %534 = vmatmul.bf16.gmra.mxu2 %v438_v52  ;;  %v351_v55 = vadd.f32 %v2001_v10, %v350_v53 }
  0xf5   :  { %v400_v58 = vadd.f32 %v399_v54, %v351_v55 }
  0xf7   :  { %v427_v61 = vmax.f32 %v400_v58, 0.0 }
  0xfa   :  { %v352_v56 = vpop.f32.mrf.mxu0 }
  0xfb   :  { %v401_v57 = vpop.f32.mrf.mxu1  ;;  %v353_v59 = vadd.f32 %v2001_v10, %v352_v56 }
  0xfd   :  { %v402_v60 = vadd.f32 %v401_v57, %v353_v59 }
  0xff   :  { %v428_v62 = vmax.f32 %v402_v60, 0.0 }
 0x101   :  { %v439_v63 = vpack.c.bf16 %v428_v62, %v427_v61 }
 0x102   :  { %v355_v0 = vpop.f32.mrf.mxu0 }
 0x103   :  { %v404_v1 = vpop.f32.mrf.mxu1  ;;  %539 = vmatmul.bf16.gmra.mxu2 %v439_v63  ;;  %v356_v2 = vadd.f32 %v2001_v10, %v355_v0 }
 0x105   :  { %v405_v5 = vadd.f32 %v404_v1, %v356_v2 }
 0x107   :  { %v429_v8 = vmax.f32 %v405_v5, 0.0 }
 0x10a   :  { %v357_v3 = vpop.f32.mrf.mxu0 }
 0x10b   :  { %v406_v4 = vpop.f32.mrf.mxu1  ;;  %v358_v6 = vadd.f32 %v2001_v10, %v357_v3 }
 0x10d   :  { %v407_v7 = vadd.f32 %v406_v4, %v358_v6 }
 0x10f   :  { %v430_v9 = vmax.f32 %v407_v7, 0.0 }
 0x111   :  { %v440_v11 = vpack.c.bf16 %v430_v9, %v429_v8 }
 0x112   :  { %v360_v12 = vpop.f32.mrf.mxu0 }
 0x113   :  { %v409_v13 = vpop.f32.mrf.mxu1  ;;  %544 = vmatmul.bf16.gmra.mxu2 %v440_v11  ;;  %v361_v16 = vadd.f32 %v2001_v10, %v360_v12 }
 0x115   :  { %v410_v20 = vadd.f32 %v409_v13, %v361_v16 }
 0x117   :  { %v431_v24 = vmax.f32 %v410_v20, 0.0 }
 0x11a   :  { %v362_v18 = vpop.f32.mrf.mxu0 }
 0x11b   :  { %v411_v19 = vpop.f32.mrf.mxu1  ;;  %v363_v21 = vadd.f32 %v2001_v10, %v362_v18 }
 0x11d   :  { %v412_v22 = vadd.f32 %v411_v19, %v363_v21 }
 0x11f   :  { %v432_v25 = vmax.f32 %v412_v22, 0.0 }
 0x121   :  { %v441_v26 = vpack.c.bf16 %v432_v25, %v431_v24 }
 0x122   :  { %v365_v27 = vpop.f32.mrf.mxu0 }
 0x123   :  { %v414_v28 = vpop.f32.mrf.mxu1  ;;  %549 = vmatmul.bf16.gmra.mxu2 %v441_v26  ;;  %v366_v30 = vadd.f32 %v2001_v10, %v365_v27 }
 0x125   :  { %v415_v33 = vadd.f32 %v414_v28, %v366_v30 }
 0x127   :  { %v433_v38 = vmax.f32 %v415_v33, 0.0 }
 0x12a   :  { %v367_v32 = vpop.f32.mrf.mxu0 }
 0x12b   :  { %v368_v34 = vadd.f32 %v2001_v10, %v367_v32  ;;  %v416_v35 = vpop.f32.mrf.mxu1 }
 0x12d   :  { %v417_v37 = vadd.f32 %v416_v35, %v368_v34  ;;  %v2025_v35 = vld [vmem:[%s2192_s6] ss:$0 sm:$0xff]  ;;  %s1927_s6 = smov [#allocation10]  }
 0x12e   :  { %s1318_s29 = sshll.u32 %s1927_s6, 4  ;;  %s1319_s29 = int_to_ptr.vmem [resolvable:$true] %s1318_s29 }
 0x12f   :  { %v434_v39 = vmax.f32 %v417_v37, 0.0 }
 0x131   :  { %v442_v41 = vpack.c.bf16 %v434_v39, %v433_v38 }
 0x133   :  { %554 = vmatmul.bf16.gmra.mxu2 %v442_v41 }
 0x146   :  { %v520_v42 = vpop.f32.mrf.mxu2 }
 0x147   :  { %v521_v44 = vadd.f32 %v1667_v43, %v520_v42 }
 0x149   :  { %v560_v47 = vmax.f32 %v521_v44, 0.0 }
 0x14e   :  { %v522_v45 = vpop.f32.mrf.mxu2 }
 0x14f   :  { %v523_v46 = vadd.f32 %v1667_v43, %v522_v45 }
 0x151   :  { %v561_v10 = vmax.f32 %v523_v46, 0.0 }
 0x153   :  { %v576_v48 = vpack.c.bf16 %v561_v10, %v560_v47 }
 0x155   :  { %660 = vmatmul.bf16.vlgmr.msra.gmra.mxu3 %v576_v48 }
 0x156   :  { %v525_v49 = vpop.f32.mrf.mxu2 }
 0x157   :  { %v526_v50 = vadd.f32 %v1667_v43, %v525_v49  ;;  %v1005_v49 = vlaneseq }
 0x159   :  { %v562_v53 = vmax.f32 %v526_v50, 0.0 }
 0x15e   :  { %v527_v51 = vpop.f32.mrf.mxu2 }
 0x15f   :  { %v528_v52 = vadd.f32 %v1667_v43, %v527_v51 }
 0x161   :  { %v563_v54 = vmax.f32 %v528_v52, 0.0 }
 0x163   :  { %v577_v55 = vpack.c.bf16 %v563_v54, %v562_v53  ;;  %v2030_v54 = vand.u32 127, %v1005_v49 }
 0x165   :  { %665 = vmatmul.bf16.gmra.mxu3 %v577_v55  ;;  %vm1007_vm3 = vcmp.lt.s32.totalorder %v2030_v54, 32 }
 0x166   :  { %v530_v56 = vpop.f32.mrf.mxu2 }
 0x167   :  { %v531_v57 = vadd.f32 %v1667_v43, %v530_v56 }
 0x169   :  { %v564_v60 = vmax.f32 %v531_v57, 0.0 }
 0x16e   :  { %v532_v58 = vpop.f32.mrf.mxu2 }
 0x16f   :  { %v533_v59 = vadd.f32 %v1667_v43, %v532_v58 }
 0x171   :  { %v565_v61 = vmax.f32 %v533_v59, 0.0 }
 0x173   :  { %v578_v62 = vpack.c.bf16 %v565_v61, %v564_v60 }
 0x175   :  { %670 = vmatmul.bf16.gmra.mxu3 %v578_v62 }
 0x176   :  { %v535_v63 = vpop.f32.mrf.mxu2 }
 0x177   :  { %v536_v0 = vadd.f32 %v1667_v43, %v535_v63 }
 0x179   :  { %v566_v3 = vmax.f32 %v536_v0, 0.0 }
 0x17e   :  { %v537_v1 = vpop.f32.mrf.mxu2 }
 0x17f   :  { %v538_v2 = vadd.f32 %v1667_v43, %v537_v1 }
 0x181   :  { %v567_v4 = vmax.f32 %v538_v2, 0.0 }
 0x183   :  { %v579_v5 = vpack.c.bf16 %v567_v4, %v566_v3 }
 0x185   :  { %675 = vmatmul.bf16.gmra.mxu3 %v579_v5 }
 0x186   :  { %v540_v6 = vpop.f32.mrf.mxu2 }
 0x187   :  { %v541_v7 = vadd.f32 %v1667_v43, %v540_v6 }
 0x189   :  { %v568_v11 = vmax.f32 %v541_v7, 0.0 }
 0x18e   :  { %v542_v8 = vpop.f32.mrf.mxu2 }
 0x18f   :  { %v543_v9 = vadd.f32 %v1667_v43, %v542_v8 }
 0x191   :  { %v569_v12 = vmax.f32 %v543_v9, 0.0 }
 0x193   :  { %v580_v13 = vpack.c.bf16 %v569_v12, %v568_v11 }
 0x195   :  { %680 = vmatmul.bf16.gmra.mxu3 %v580_v13 }
 0x196   :  { %v545_v14 = vpop.f32.mrf.mxu2 }
 0x197   :  { %v546_v15 = vadd.f32 %v1667_v43, %v545_v14 }
 0x199   :  { %v570_v18 = vmax.f32 %v546_v15, 0.0 }
 0x19e   :  { %v547_v16 = vpop.f32.mrf.mxu2 }
 0x19f   :  { %v548_v17 = vadd.f32 %v1667_v43, %v547_v16 }
 0x1a1   :  { %v571_v19 = vmax.f32 %v548_v17, 0.0 }
 0x1a3   :  { %v581_v20 = vpack.c.bf16 %v571_v19, %v570_v18 }
 0x1a5   :  { %685 = vmatmul.bf16.gmra.mxu3 %v581_v20 }
 0x1a6   :  { %v550_v21 = vpop.f32.mrf.mxu2 }
 0x1a7   :  { %v551_v22 = vadd.f32 %v1667_v43, %v550_v21 }
 0x1a9   :  { %v572_v25 = vmax.f32 %v551_v22, 0.0 }
 0x1ae   :  { %v552_v23 = vpop.f32.mrf.mxu2 }
 0x1af   :  { %v553_v24 = vadd.f32 %v1667_v43, %v552_v23 }
 0x1b1   :  { %v573_v26 = vmax.f32 %v553_v24, 0.0 }
 0x1b3   :  { %v582_v27 = vpack.c.bf16 %v573_v26, %v572_v25 }
 0x1b5   :  { %690 = vmatmul.bf16.gmra.mxu3 %v582_v27 }
 0x1b6   :  { %v555_v28 = vpop.f32.mrf.mxu2 }
 0x1b7   :  { %v556_v29 = vadd.f32 %v1667_v43, %v555_v28 }
 0x1b9   :  { %v574_v32 = vmax.f32 %v556_v29, 0.0 }
 0x1be   :  { %v557_v30 = vpop.f32.mrf.mxu2 }
 0x1bf   :  { %v558_v31 = vadd.f32 %v1667_v43, %v557_v30 }
 0x1c1   :  { %v575_v33 = vmax.f32 %v558_v31, 0.0 }
 0x1c3   :  { %v583_v34 = vpack.c.bf16 %v575_v33, %v574_v32 }
 0x1c5   :  { %695 = vmatmul.bf16.gmra.mxu3 %v583_v34 }
 0x1d8   :  { %v661_v36 = vpop.f32.mrf.mxu3 }
 0x1d9   :  { %v662_v37 = vadd.f32 %v2025_v35, %v661_v36 }
 0x1db   :  { %v1545_v38 = vmul.f32 -1.442695, %v662_v37 }
 0x1dd   :  { %1669 = vpow2.f32 %v1545_v38 }
 0x1e0   :  { %v663_v39 = vpop.f32.mrf.mxu3 }
 0x1e1   :  { %v664_v40 = vadd.f32 %v2025_v35, %v663_v39 }
 0x1e3   :  { %v1670_v41 = vpop.eup %1669  ;;  %v1546_v42 = vmul.f32 -1.442695, %v664_v40 }
 0x1e4   :  { %v749_v43 = vadd.f32 1.0, %v1670_v41 }
 0x1e5   :  { %1671 = vpow2.f32 %v1546_v42 }
 0x1e6   :  { %1673 = vrcp.f32 %v749_v43  ;;  %v776_v53 = vand.u32 2147483648, %v749_v43  ;;  %v774_v57 = vand.u32 2147483647, %v749_v43  ;;  %vm770_vm1 = vweird.f32 %v749_v43 }
 0x1e8   :  { %v666_v44 = vpop.f32.mrf.mxu3  ;;  %v777_v63 = vor.u32 1.1754944e-38, %v776_v53  ;;  %vm775_vm4 = vcmp.eq.f32.partialorder %v774_v57, 8.507059e+37 }
 0x1e9   :  { %v667_v45 = vadd.f32 %v2025_v35, %v666_v44 }
 0x1eb   :  { %v1672_v46 = vpop.eup %1671  ;;  %v1547_v47 = vmul.f32 -1.442695, %v667_v45 }
 0x1ec   :  { %v1674_v10 = vpop.eup %1673  ;;  %v750_v48 = vadd.f32 1.0, %v1672_v46 }
 0x1ed   :  { %1675 = vpow2.f32 %v1547_v47  ;;  %v766_v50 = vmul.f32 %v1674_v10, %v749_v43  ;;  %vm771_vm0 = vweird.f32 %v1674_v10 }
 0x1ee   :  { %1677 = vrcp.f32 %v750_v48  ;;  %vm772_vm2 = vmor %vm770_vm1, %vm771_vm0  ;;  %v791_v7 = vand.u32 2147483648, %v750_v48  ;;  %v789_v11 = vand.u32 2147483647, %v750_v48  ;;  %vm785_vm6 = vweird.f32 %v750_v48 }
 0x1ef   :  { %v767_v51 = vsub.f32 1.0, %v766_v50 }
 0x1f0   :  { %v668_v52 = vpop.f32.mrf.mxu3  ;;  %v792_v17 = vor.u32 1.1754944e-38, %v791_v7  ;;  %vm790_vm8 = vcmp.eq.f32.partialorder %v789_v11, 8.507059e+37 }
 0x1f1   :  { %v669_v55 = vadd.f32 %v2025_v35, %v668_v52  ;;  %v768_v56 = vmul.f32 %v1674_v10, %v767_v51 }
 0x1f3   :  { %v1676_v58 = vpop.eup %1675  ;;  %v1548_v59 = vmul.f32 -1.442695, %v669_v55  ;;  %v769_v60 = vadd.f32 %v1674_v10, %v768_v56 }
 0x1f4   :  { %v1678_v61 = vpop.eup %1677  ;;  %v751_v62 = vadd.f32 1.0, %v1676_v58 }
 0x1f5   :  { %v781_v0 = vmul.f32 %v1678_v61, %v750_v48  ;;  %1679 = vpow2.f32 %v1548_v59  ;;  %v773_v1 = vsel %vm772_vm2, %v1674_v10, %v769_v60  ;;  %vm786_vm5 = vweird.f32 %v1678_v61 }
 0x1f6   :  { %1681 = vrcp.f32 %v751_v62  ;;  %v778_v2 = vsel %vm775_vm4, %v777_v63, %v773_v1  ;;  %vm787_vm7 = vmor %vm785_vm6, %vm786_vm5  ;;  %v806_v25 = vand.u32 2147483648, %v751_v62  ;;  %v804_v28 = vand.u32 2147483647, %v751_v62 }
 0x1f7   :  { %v2036_v3 = vsel %vm1007_vm3, %v778_v2, 0.0  ;;  %v782_v4 = vsub.f32 1.0, %v781_v0  ;;  %vm800_vm10 = vweird.f32 %v751_v62 }
 0x1f8   :  { %v671_v5 = vpop.f32.mrf.mxu3  ;;  %v1042_v6 = vmul.f32 %v2036_v3, %v2036_v3  ;;  %1026 = vst [vmem:[#allocation10] sm:$0xff] %v2036_v3  ;;  %v807_v34 = vor.u32 1.1754944e-38, %v806_v25  ;;  %vm805_vm12 = vcmp.eq.f32.partialorder %v804_v28, 8.507059e+37 }
 0x1f9   :  { %v672_v8 = vadd.f32 %v2025_v35, %v671_v5  ;;  %v783_v9 = vmul.f32 %v1678_v61, %v782_v4 }
 0x1fa   :  { %1058 = vadd.xlane.f32.xlu0 %v1042_v6 }
 0x1fb   :  { %v1680_v12 = vpop.eup %1679  ;;  %v1549_v13 = vmul.f32 -1.442695, %v672_v8  ;;  %v784_v14 = vadd.f32 %v1678_v61, %v783_v9 }
 0x1fc   :  { %v1682_v15 = vpop.eup %1681  ;;  %v752_v16 = vadd.f32 1.0, %v1680_v12 }
 0x1fd   :  { %1683 = vpow2.f32 %v1549_v13  ;;  %v788_v18 = vsel %vm787_vm7, %v1678_v61, %v784_v14  ;;  %v796_v19 = vmul.f32 %v1682_v15, %v751_v62  ;;  %vm801_vm9 = vweird.f32 %v1682_v15 }
 0x1fe   :  { %1685 = vrcp.f32 %v752_v16  ;;  %v793_v20 = vsel %vm790_vm8, %v792_v17, %v788_v18  ;;  %vm802_vm11 = vmor %vm800_vm10, %vm801_vm9  ;;  %v821_v43 = vand.u32 2147483648, %v752_v16  ;;  %v819_v46 = vand.u32 2147483647, %v752_v16 }
 0x1ff   :  { %v2044_v21 = vsel %vm1007_vm3, %v793_v20, 0.0  ;;  %v797_v22 = vsub.f32 1.0, %v796_v19  ;;  %vm815_vm14 = vweird.f32 %v752_v16 }
 0x200   :  { %v673_v23 = vpop.f32.mrf.mxu3  ;;  %1027 = vst [vmem:[#allocation10 + $0x8] sm:$0xff] %v2044_v21  ;;  %v1043_v24 = vmul.f32 %v2044_v21, %v2044_v21  ;;  %v822_v51 = vor.u32 1.1754944e-38, %v821_v43  ;;  %vm820_vm0 = vcmp.eq.f32.partialorder %v819_v46, 8.507059e+37 }
 0x201   :  { %v674_v26 = vadd.f32 %v2025_v35, %v673_v23  ;;  %v798_v27 = vmul.f32 %v1682_v15, %v797_v22 }
 0x202   :  { %1060 = vadd.xlane.f32.xlu0 %v1043_v24 }
 0x203   :  { %v1684_v29 = vpop.eup %1683  ;;  %v1550_v30 = vmul.f32 -1.442695, %v674_v26  ;;  %v799_v31 = vadd.f32 %v1682_v15, %v798_v27 }
 0x204   :  { %v1686_v32 = vpop.eup %1685  ;;  %v753_v33 = vadd.f32 1.0, %v1684_v29 }
 0x205   :  { %v811_v36 = vmul.f32 %v1686_v32, %v752_v16  ;;  %1687 = vpow2.f32 %v1550_v30  ;;  %v803_v37 = vsel %vm802_vm11, %v1682_v15, %v799_v31  ;;  %vm816_vm13 = vweird.f32 %v1686_v32 }
 0x206   :  { %1689 = vrcp.f32 %v753_v33  ;;  %v808_v38 = vsel %vm805_vm12, %v807_v34, %v803_v37  ;;  %vm817_vm15 = vmor %vm815_vm14, %vm816_vm13  ;;  %v836_v60 = vand.u32 2147483648, %v753_v33  ;;  %v834_v63 = vand.u32 2147483647, %v753_v33 }
 0x207   :  { %v2052_v39 = vsel %vm1007_vm3, %v808_v38, 0.0  ;;  %v812_v40 = vsub.f32 1.0, %v811_v36  ;;  %vm830_vm2 = vweird.f32 %v753_v33 }
 0x208   :  { %v676_v41 = vpop.f32.mrf.mxu3  ;;  %v1044_v42 = vmul.f32 %v2052_v39, %v2052_v39  ;;  %1028 = vst [vmem:[#allocation10 + $0x10] sm:$0xff] %v2052_v39  ;;  %v837_v6 = vor.u32 1.1754944e-38, %v836_v60  ;;  %vm835_vm5 = vcmp.eq.f32.partialorder %v834_v63, 8.507059e+37 }
 0x209   :  { %v677_v44 = vadd.f32 %v2025_v35, %v676_v41  ;;  %v813_v45 = vmul.f32 %v1686_v32, %v812_v40 }
 0x20a   :  { %1062 = vadd.xlane.f32.xlu1 %v1044_v42 }
 0x20b   :  { %v1688_v47 = vpop.eup %1687  ;;  %v1551_v10 = vmul.f32 -1.442695, %v677_v44  ;;  %v814_v48 = vadd.f32 %v1686_v32, %v813_v45 }
 0x20c   :  { %v1690_v49 = vpop.eup %1689  ;;  %v754_v50 = vadd.f32 1.0, %v1688_v47 }
 0x20d   :  { %1691 = vpow2.f32 %v1551_v10  ;;  %v818_v52 = vsel %vm817_vm15, %v1686_v32, %v814_v48  ;;  %v826_v53 = vmul.f32 %v1690_v49, %v753_v33  ;;  %vm831_vm1 = vweird.f32 %v1690_v49 }
 0x20e   :  { %1693 = vrcp.f32 %v754_v50  ;;  %v823_v55 = vsel %vm820_vm0, %v822_v51, %v818_v52  ;;  %vm832_vm4 = vmor %vm830_vm2, %vm831_vm1  ;;  %v851_v15 = vand.u32 2147483648, %v754_v50  ;;  %v849_v18 = vand.u32 2147483647, %v754_v50 }
 0x20f   :  { %v2060_v56 = vsel %vm1007_vm3, %v823_v55, 0.0  ;;  %v827_v57 = vsub.f32 1.0, %v826_v53  ;;  %vm845_vm7 = vweird.f32 %v754_v50 }
 0x210   :  { %v678_v58 = vpop.f32.mrf.mxu3  ;;  %1029 = vst [vmem:[#allocation10 + $0x18] sm:$0xff] %v2060_v56  ;;  %v1045_v59 = vmul.f32 %v2060_v56, %v2060_v56  ;;  %v852_v25 = vor.u32 1.1754944e-38, %v851_v15  ;;  %vm850_vm9 = vcmp.eq.f32.partialorder %v849_v18, 8.507059e+37 }
 0x211   :  { %v679_v61 = vadd.f32 %v2025_v35, %v678_v58  ;;  %v828_v62 = vmul.f32 %v1690_v49, %v827_v57 }
 0x212   :  { %1064 = vadd.xlane.f32.xlu1 %v1045_v59 }
 0x213   :  { %v1692_v0 = vpop.eup %1691  ;;  %v1552_v1 = vmul.f32 -1.442695, %v679_v61  ;;  %v829_v2 = vadd.f32 %v1690_v49, %v828_v62 }
 0x214   :  { %v1694_v4 = vpop.eup %1693  ;;  %v755_v5 = vadd.f32 1.0, %v1692_v0 }
 0x215   :  { %v841_v7 = vmul.f32 %v1694_v4, %v754_v50  ;;  %1695 = vpow2.f32 %v1552_v1  ;;  %v833_v8 = vsel %vm832_vm4, %v1690_v49, %v829_v2  ;;  %vm846_vm6 = vweird.f32 %v1694_v4 }
 0x216   :  { %1697 = vrcp.f32 %v755_v5  ;;  %v838_v9 = vsel %vm835_vm5, %v837_v6, %v833_v8  ;;  %vm847_vm8 = vmor %vm845_vm7, %vm846_vm6  ;;  %v866_v33 = vand.u32 2147483648, %v755_v5  ;;  %v864_v37 = vand.u32 2147483647, %v755_v5 }
 0x217   :  { %v2068_v11 = vsel %vm1007_vm3, %v838_v9, 0.0  ;;  %v842_v12 = vsub.f32 1.0, %v841_v7  ;;  %vm860_vm11 = vweird.f32 %v755_v5 }
 0x218   :  { %v681_v13 = vpop.f32.mrf.mxu3  ;;  %v1046_v14 = vmul.f32 %v2068_v11, %v2068_v11  ;;  %1030 = vst [vmem:[#allocation10 + $0x20] sm:$0xff] %v2068_v11  ;;  %v867_v44 = vor.u32 1.1754944e-38, %v866_v33  ;;  %vm865_vm13 = vcmp.eq.f32.partialorder %v864_v37, 8.507059e+37 }
 0x219   :  { %v682_v16 = vadd.f32 %v2025_v35, %v681_v13  ;;  %v843_v17 = vmul.f32 %v1694_v4, %v842_v12 }
 0x21a   :  { %1066 = vadd.xlane.f32.xlu2 %v1046_v14 }
 0x21b   :  { %v1696_v19 = vpop.eup %1695  ;;  %v1553_v20 = vmul.f32 -1.442695, %v682_v16  ;;  %v844_v22 = vadd.f32 %v1694_v4, %v843_v17 }
 0x21c   :  { %v1698_v23 = vpop.eup %1697  ;;  %v756_v24 = vadd.f32 1.0, %v1696_v19 }
 0x21d   :  { %v856_v26 = vmul.f32 %v1698_v23, %v755_v5  ;;  %1699 = vpow2.f32 %v1553_v20  ;;  %v848_v27 = vsel %vm847_vm8, %v1694_v4, %v844_v22  ;;  %vm861_vm10 = vweird.f32 %v1698_v23 }
 0x21e   :  { %1701 = vrcp.f32 %v756_v24  ;;  %v853_v28 = vsel %vm850_vm9, %v852_v25, %v848_v27  ;;  %vm862_vm12 = vmor %vm860_vm11, %vm861_vm10  ;;  %v881_v51 = vand.u32 2147483648, %v756_v24  ;;  %v879_v55 = vand.u32 2147483647, %v756_v24 }
 0x21f   :  { %v2076_v29 = vsel %vm1007_vm3, %v853_v28, 0.0  ;;  %v857_v30 = vsub.f32 1.0, %v856_v26  ;;  %vm875_vm15 = vweird.f32 %v756_v24 }
 0x220   :  { %v683_v31 = vpop.f32.mrf.mxu3  ;;  %1031 = vst [vmem:[#allocation10 + $0x28] sm:$0xff] %v2076_v29  ;;  %v1047_v32 = vmul.f32 %v2076_v29, %v2076_v29  ;;  %v882_v62 = vor.u32 1.1754944e-38, %v881_v51  ;;  %vm880_vm1 = vcmp.eq.f32.partialorder %v879_v55, 8.507059e+37 }
 0x221   :  { %v684_v34 = vadd.f32 %v2025_v35, %v683_v31  ;;  %v858_v36 = vmul.f32 %v1698_v23, %v857_v30 }
 0x222   :  { %1068 = vadd.xlane.f32.xlu2 %v1047_v32 }
 0x223   :  { %v1700_v38 = vpop.eup %1699  ;;  %v1554_v40 = vmul.f32 -1.442695, %v684_v34  ;;  %v859_v41 = vadd.f32 %v1698_v23, %v858_v36 }
 0x224   :  { %v1702_v42 = vpop.eup %1701  ;;  %v757_v43 = vadd.f32 1.0, %v1700_v38 }
 0x225   :  { %v871_v45 = vmul.f32 %v1702_v42, %v756_v24  ;;  %1703 = vpow2.f32 %v1554_v40  ;;  %v863_v46 = vsel %vm862_vm12, %v1698_v23, %v859_v41  ;;  %vm876_vm14 = vweird.f32 %v1702_v42 }
 0x226   :  { %1705 = vrcp.f32 %v757_v43  ;;  %v868_v47 = vsel %vm865_vm13, %v867_v44, %v863_v46  ;;  %vm877_vm0 = vmor %vm875_vm15, %vm876_vm14  ;;  %v896_v7 = vand.u32 2147483648, %v757_v43  ;;  %v894_v12 = vand.u32 2147483647, %v757_v43 }
 0x227   :  { %v2084_v10 = vsel %vm1007_vm3, %v868_v47, 0.0  ;;  %v872_v48 = vsub.f32 1.0, %v871_v45  ;;  %vm890_vm4 = vweird.f32 %v757_v43 }
 0x228   :  { %v686_v49 = vpop.f32.mrf.mxu3  ;;  %1032 = vst [vmem:[#allocation10 + $0x30] sm:$0xff] %v2084_v10  ;;  %v1048_v50 = vmul.f32 %v2084_v10, %v2084_v10  ;;  %v897_v18 = vor.u32 1.1754944e-38, %v896_v7  ;;  %vm895_vm6 = vcmp.eq.f32.partialorder %v894_v12, 8.507059e+37 }
 0x229   :  { %v687_v52 = vadd.f32 %v2025_v35, %v686_v49  ;;  %v873_v53 = vmul.f32 %v1702_v42, %v872_v48 }
 0x22a   :  { %1070 = vadd.xlane.f32.xlu0 %v1048_v50 }
 0x22b   :  { %v1704_v57 = vpop.eup %1703  ;;  %v1555_v58 = vmul.f32 -1.442695, %v687_v52  ;;  %v874_v59 = vadd.f32 %v1702_v42, %v873_v53 }
 0x22c   :  { %v1706_v60 = vpop.eup %1705  ;;  %v758_v61 = vadd.f32 1.0, %v1704_v57 }
 0x22d   :  { %v886_v63 = vmul.f32 %v1706_v60, %v757_v43  ;;  %1707 = vpow2.f32 %v1555_v58  ;;  %v878_v0 = vsel %vm877_vm0, %v1702_v42, %v874_v59  ;;  %vm891_vm2 = vweird.f32 %v1706_v60 }
 0x22e   :  { %1709 = vrcp.f32 %v758_v61  ;;  %v883_v1 = vsel %vm880_vm1, %v882_v62, %v878_v0  ;;  %vm892_vm5 = vmor %vm890_vm4, %vm891_vm2  ;;  %v911_v27 = vand.u32 2147483648, %v758_v61  ;;  %v909_v31 = vand.u32 2147483647, %v758_v61 }
 0x22f   :  { %v2092_v2 = vsel %vm1007_vm3, %v883_v1, 0.0  ;;  %v887_v4 = vsub.f32 1.0, %v886_v63  ;;  %vm905_vm8 = vweird.f32 %v758_v61 }
 0x230   :  { %v688_v5 = vpop.f32.mrf.mxu3  ;;  %1033 = vst [vmem:[#allocation10 + $0x38] sm:$0xff] %v2092_v2  ;;  %v1049_v6 = vmul.f32 %v2092_v2, %v2092_v2  ;;  %v912_v38 = vor.u32 1.1754944e-38, %v911_v27  ;;  %vm910_vm10 = vcmp.eq.f32.partialorder %v909_v31, 8.507059e+37 }
 0x231   :  { %v689_v8 = vadd.f32 %v2025_v35, %v688_v5  ;;  %v888_v9 = vmul.f32 %v1706_v60, %v887_v4 }
 0x232   :  { %1072 = vadd.xlane.f32.xlu1 %v1049_v6 }
 0x233   :  { %v1708_v13 = vpop.eup %1707  ;;  %v1556_v14 = vmul.f32 -1.442695, %v689_v8  ;;  %v889_v15 = vadd.f32 %v1706_v60, %v888_v9 }
 0x234   :  { %v1710_v16 = vpop.eup %1709  ;;  %v759_v17 = vadd.f32 1.0, %v1708_v13 }
 0x235   :  { %v901_v19 = vmul.f32 %v1710_v16, %v758_v61  ;;  %1711 = vpow2.f32 %v1556_v14  ;;  %v893_v20 = vsel %vm892_vm5, %v1706_v60, %v889_v15  ;;  %vm906_vm7 = vweird.f32 %v1710_v16 }
 0x236   :  { %1713 = vrcp.f32 %v759_v17  ;;  %v898_v22 = vsel %vm895_vm6, %v897_v18, %v893_v20  ;;  %vm907_vm9 = vmor %vm905_vm8, %vm906_vm7  ;;  %v926_v47 = vand.u32 2147483648, %v759_v17  ;;  %v924_v50 = vand.u32 2147483647, %v759_v17 }
 0x237   :  { %v2100_v23 = vsel %vm1007_vm3, %v898_v22, 0.0  ;;  %v902_v24 = vsub.f32 1.0, %v901_v19  ;;  %vm920_vm12 = vweird.f32 %v759_v17 }
 0x238   :  { %v691_v25 = vpop.f32.mrf.mxu3  ;;  %1034 = vst [vmem:[#allocation10 + $0x40] sm:$0xff] %v2100_v23  ;;  %v1050_v26 = vmul.f32 %v2100_v23, %v2100_v23  ;;  %v927_v58 = vor.u32 1.1754944e-38, %v926_v47  ;;  %vm925_vm14 = vcmp.eq.f32.partialorder %v924_v50, 8.507059e+37 }
 0x239   :  { %v692_v28 = vadd.f32 %v2025_v35, %v691_v25  ;;  %v903_v30 = vmul.f32 %v1710_v16, %v902_v24 }
 0x23a   :  { %1074 = vadd.xlane.f32.xlu2 %v1050_v26 }
 0x23b   :  { %v1712_v32 = vpop.eup %1711  ;;  %v1557_v33 = vmul.f32 -1.442695, %v692_v28  ;;  %v904_v34 = vadd.f32 %v1710_v16, %v903_v30 }
 0x23c   :  { %v1714_v36 = vpop.eup %1713  ;;  %v760_v37 = vadd.f32 1.0, %v1712_v32 }
 0x23d   :  { %v916_v40 = vmul.f32 %v1714_v36, %v759_v17  ;;  %1715 = vpow2.f32 %v1557_v33  ;;  %v908_v41 = vsel %vm907_vm9, %v1710_v16, %v904_v34  ;;  %vm921_vm11 = vweird.f32 %v1714_v36 }
 0x23e   :  { %1717 = vrcp.f32 %v760_v37  ;;  %v913_v42 = vsel %vm910_vm10, %v912_v38, %v908_v41  ;;  %vm922_vm13 = vmor %vm920_vm12, %vm921_vm11  ;;  %v941_v4 = vand.u32 2147483648, %v760_v37  ;;  %v939_v7 = vand.u32 2147483647, %v760_v37 }
 0x23f   :  { %v2108_v43 = vsel %vm1007_vm3, %v913_v42, 0.0  ;;  %v917_v44 = vsub.f32 1.0, %v916_v40  ;;  %vm935_vm0 = vweird.f32 %v760_v37 }
 0x240   :  { %v693_v45 = vpop.f32.mrf.mxu3  ;;  %1035 = vst [vmem:[#allocation10 + $0x48] sm:$0xff] %v2108_v43  ;;  %v1051_v46 = vmul.f32 %v2108_v43, %v2108_v43  ;;  %v942_v15 = vor.u32 1.1754944e-38, %v941_v4  ;;  %vm940_vm2 = vcmp.eq.f32.partialorder %v939_v7, 8.507059e+37 }
 0x241   :  { %v694_v48 = vadd.f32 %v2025_v35, %v693_v45  ;;  %v918_v49 = vmul.f32 %v1714_v36, %v917_v44 }
 0x242   :  { %1076 = vadd.xlane.f32.xlu0 %v1051_v46 }
 0x243   :  { %v1716_v51 = vpop.eup %1715  ;;  %v1558_v52 = vmul.f32 -1.442695, %v694_v48  ;;  %v919_v53 = vadd.f32 %v1714_v36, %v918_v49 }
 0x244   :  { %v1718_v55 = vpop.eup %1717  ;;  %v761_v57 = vadd.f32 1.0, %v1716_v51 }
 0x245   :  { %v931_v59 = vmul.f32 %v1718_v55, %v760_v37  ;;  %1719 = vpow2.f32 %v1558_v52  ;;  %v923_v60 = vsel %vm922_vm13, %v1714_v36, %v919_v53  ;;  %vm936_vm15 = vweird.f32 %v1718_v55 }
 0x246   :  { %1721 = vrcp.f32 %v761_v57  ;;  %v928_v61 = vsel %vm925_vm14, %v927_v58, %v923_v60  ;;  %vm937_vm1 = vmor %vm935_vm0, %vm936_vm15  ;;  %v956_v25 = vand.u32 2147483648, %v761_v57  ;;  %v954_v28 = vand.u32 2147483647, %v761_v57 }
 0x247   :  { %v2116_v62 = vsel %vm1007_vm3, %v928_v61, 0.0  ;;  %v932_v63 = vsub.f32 1.0, %v931_v59  ;;  %vm950_vm5 = vweird.f32 %v761_v57 }
 0x248   :  { %v696_v0 = vpop.f32.mrf.mxu3  ;;  %1036 = vst [vmem:[#allocation10 + $0x50] sm:$0xff] %v2116_v62  ;;  %v1052_v1 = vmul.f32 %v2116_v62, %v2116_v62  ;;  %v957_v36 = vor.u32 1.1754944e-38, %v956_v25  ;;  %vm955_vm7 = vcmp.eq.f32.partialorder %v954_v28, 8.507059e+37 }
 0x249   :  { %v697_v5 = vadd.f32 %v2025_v35, %v696_v0  ;;  %v933_v6 = vmul.f32 %v1718_v55, %v932_v63 }
 0x24a   :  { %1078 = vadd.xlane.f32.xlu1 %v1052_v1 }
 0x24b   :  { %v1720_v8 = vpop.eup %1719  ;;  %v1559_v9 = vmul.f32 -1.442695, %v697_v5  ;;  %v934_v12 = vadd.f32 %v1718_v55, %v933_v6 }
 0x24c   :  { %v1722_v13 = vpop.eup %1721  ;;  %v762_v14 = vadd.f32 1.0, %v1720_v8 }
 0x24d   :  { %v946_v16 = vmul.f32 %v1722_v13, %v761_v57  ;;  %1723 = vpow2.f32 %v1559_v9  ;;  %v938_v17 = vsel %vm937_vm1, %v1718_v55, %v934_v12  ;;  %vm951_vm4 = vweird.f32 %v1722_v13 }
 0x24e   :  { %1725 = vrcp.f32 %v762_v14  ;;  %v943_v18 = vsel %vm940_vm2, %v942_v15, %v938_v17  ;;  %vm952_vm6 = vmor %vm950_vm5, %vm951_vm4  ;;  %v971_v44 = vand.u32 2147483648, %v762_v14  ;;  %v969_v46 = vand.u32 2147483647, %v762_v14 }
 0x24f   :  { %v2124_v19 = vsel %vm1007_vm3, %v943_v18, 0.0  ;;  %v947_v20 = vsub.f32 1.0, %v946_v16  ;;  %vm965_vm9 = vweird.f32 %v762_v14 }
 0x250   :  { %v698_v22 = vpop.f32.mrf.mxu3  ;;  %1037 = vst [vmem:[#allocation10 + $0x58] sm:$0xff] %v2124_v19  ;;  %v1053_v24 = vmul.f32 %v2124_v19, %v2124_v19  ;;  %v972_v51 = vor.u32 1.1754944e-38, %v971_v44  ;;  %vm970_vm11 = vcmp.eq.f32.partialorder %v969_v46, 8.507059e+37 }
 0x251   :  { %v699_v26 = vadd.f32 %v2025_v35, %v698_v22  ;;  %v948_v27 = vmul.f32 %v1722_v13, %v947_v20 }
 0x252   :  { %1080 = vadd.xlane.f32.xlu2 %v1053_v24 }
 0x253   :  { %v1724_v30 = vpop.eup %1723  ;;  %v1560_v31 = vmul.f32 -1.442695, %v699_v26  ;;  %v949_v32 = vadd.f32 %v1722_v13, %v948_v27 }
 0x254   :  { %v1726_v33 = vpop.eup %1725  ;;  %v763_v34 = vadd.f32 1.0, %v1724_v30 }
 0x255   :  { %v961_v37 = vmul.f32 %v1726_v33, %v762_v14  ;;  %1727 = vpow2.f32 %v1560_v31  ;;  %v953_v38 = vsel %vm952_vm6, %v1722_v13, %v949_v32  ;;  %vm966_vm8 = vweird.f32 %v1726_v33 }
 0x256   :  { %1729 = vrcp.f32 %v763_v34  ;;  %v958_v40 = vsel %vm955_vm7, %v957_v36, %v953_v38  ;;  %vm967_vm10 = vmor %vm965_vm9, %vm966_vm8  ;;  %v986_v60 = vand.u32 2147483648, %v763_v34  ;;  %v984_v63 = vand.u32 2147483647, %v763_v34 }
 0x257   :  { %v2132_v35 = vsel %vm1007_vm3, %v958_v40, 0.0  ;;  %v962_v41 = vsub.f32 1.0, %v961_v37  ;;  %vm980_vm13 = vweird.f32 %v763_v34 }
 0x258   :  { %1038 = vst [vmem:[#allocation10 + $0x60] sm:$0xff] %v2132_v35  ;;  %v1054_v42 = vmul.f32 %v2132_v35, %v2132_v35  ;;  %v987_v4 = vor.u32 1.1754944e-38, %v986_v60  ;;  %vm985_vm15 = vcmp.eq.f32.partialorder %v984_v63, 8.507059e+37 }
 0x259   :  { %v963_v45 = vmul.f32 %v1726_v33, %v962_v41 }
 0x25a   :  { %1082 = vadd.xlane.f32.xlu0 %v1054_v42 }
 0x25b   :  { %v1728_v47 = vpop.eup %1727  ;;  %v964_v48 = vadd.f32 %v1726_v33, %v963_v45 }
 0x25c   :  { %v1730_v49 = vpop.eup %1729  ;;  %v764_v50 = vadd.f32 1.0, %v1728_v47 }
 0x25d   :  { %v976_v52 = vmul.f32 %v1730_v49, %v763_v34  ;;  %v968_v53 = vsel %vm967_vm10, %v1726_v33, %v964_v48  ;;  %vm981_vm12 = vweird.f32 %v1730_v49 }
 0x25e   :  { %1731 = vrcp.f32 %v764_v50  ;;  %v973_v55 = vsel %vm970_vm11, %v972_v51, %v968_v53  ;;  %vm982_vm14 = vmor %vm980_vm13, %vm981_vm12  ;;  %v1001_v13 = vand.u32 2147483648, %v764_v50  ;;  %v999_v15 = vand.u32 2147483647, %v764_v50 }
 0x25f   :  { %v2139_v57 = vsel %vm1007_vm3, %v973_v55, 0.0  ;;  %v977_v58 = vsub.f32 1.0, %v976_v52  ;;  %vm995_vm1 = vweird.f32 %v764_v50 }
 0x260   :  { %1039 = vst [vmem:[#allocation10 + $0x68] sm:$0xff] %v2139_v57  ;;  %v1055_v59 = vmul.f32 %v2139_v57, %v2139_v57  ;;  %v1002_v17 = vor.u32 1.1754944e-38, %v1001_v13  ;;  %vm1000_vm4 = vcmp.eq.f32.partialorder %v999_v15, 8.507059e+37 }
 0x261   :  { %v978_v61 = vmul.f32 %v1730_v49, %v977_v58 }
 0x262   :  { %1084 = vadd.xlane.f32.xlu1 %v1055_v59 }
 0x263   :  { %v979_v0 = vadd.f32 %v1730_v49, %v978_v61 }
 0x264   :  { %v1732_v1 = vpop.eup %1731 }
 0x265   :  { %v991_v5 = vmul.f32 %v1732_v1, %v764_v50  ;;  %v983_v6 = vsel %vm982_vm14, %v1730_v49, %v979_v0  ;;  %vm996_vm0 = vweird.f32 %v1732_v1 }
 0x266   :  { %v988_v7 = vsel %vm985_vm15, %v987_v4, %v983_v6  ;;  %vm997_vm2 = vmor %vm995_vm1, %vm996_vm0 }
 0x267   :  { %v2146_v8 = vsel %vm1007_vm3, %v988_v7, 0.0  ;;  %v992_v9 = vsub.f32 1.0, %v991_v5 }
 0x268   :  { %1040 = vst [vmem:[#allocation10 + $0x70] sm:$0xff] %v2146_v8  ;;  %v1056_v12 = vmul.f32 %v2146_v8, %v2146_v8 }
 0x269   :  { %v993_v14 = vmul.f32 %v1732_v1, %v992_v9 }
 0x26a   :  { %1086 = vadd.xlane.f32.xlu2 %v1056_v12 }
 0x26b   :  { %v994_v16 = vadd.f32 %v1732_v1, %v993_v14 }
 0x26d   :  { %v1059_v18 = vpop.xlane.xlu0 %1058  ;;  %v998_v20 = vsel %vm997_vm2, %v1732_v1, %v994_v16 }
 0x26e   :  { %v1090_v22 = vmax.f32 %v1059_v18, 1e-16  ;;  %v1003_v24 = vsel %vm1000_vm4, %v1002_v17, %v998_v20 }
 0x26f   :  { %v2153_v25 = vsel %vm1007_vm3, %v1003_v24, 0.0 }
 0x270   :  { %1733 = vrsqrt.f32 %v1090_v22  ;;  %1041 = vst [vmem:[#allocation10 + $0x78] sm:$0xff] %v2153_v25  ;;  %v1057_v26 = vmul.f32 %v2153_v25, %v2153_v25  ;;  %vm1112_vm5 = vweird.f32 %v1090_v22 }
 0x271   :  { %1326 = dma.vmem_to_hbm [thread:$0]  %s1319_s29, 2048, %s1321_s10, [#allocation4], %s1923_s1, %s1923_s1, %s1924_s17  }
 0x272   :  { %1088 = vadd.xlane.f32.xlu0 %v1057_v26 }
 0x275   :  { %v1061_v27 = vpop.xlane.xlu0 %1060 }
 0x276   :  { %v1734_v28 = vpop.eup %1733  ;;  %v1091_v30 = vmax.f32 %v1061_v27, 1e-16 }
 0x277   :  { %v1107_v31 = vmul.f32 %v1734_v28, %v1090_v22  ;;  %vm1113_vm3 = vweird.f32 %v1734_v28 }
 0x278   :  { %1735 = vrsqrt.f32 %v1091_v30  ;;  %vm1114_vm7 = vmor %vm1112_vm5, %vm1113_vm3  ;;  %vm1122_vm8 = vweird.f32 %v1091_v30 }
 0x279   :  { %v1108_v32 = vmul.f32 %v1734_v28, %v1107_v31 }
 0x27b   :  { %v1109_v33 = vmul.f32 0.5, %v1108_v32 }
 0x27d   :  { %v1063_v34 = vpop.xlane.xlu1 %1062  ;;  %v1110_v54 = vsub.f32 1.5, %v1109_v33 }
 0x27e   :  { %v1736_v36 = vpop.eup %1735  ;;  %v1092_v37 = vmax.f32 %v1063_v34, 1e-16 }
 0x27f   :  { %v1117_v38 = vmul.f32 %v1736_v36, %v1091_v30  ;;  %v1111_v41 = vmul.f32 %v1734_v28, %v1110_v54  ;;  %vm1123_vm6 = vweird.f32 %v1736_v36 }
 0x280   :  { %1737 = vrsqrt.f32 %v1092_v37  ;;  %vm1124_vm9 = vmor %vm1122_vm8, %vm1123_vm6  ;;  %vm1132_vm11 = vweird.f32 %v1092_v37 }
 0x281   :  { %v1118_v40 = vmul.f32 %v1736_v36, %v1117_v38  ;;  %v1115_v48 = vsel %vm1114_vm7, %v1734_v28, %v1111_v41 }
 0x282   :  { %v1266_v53 = vmul.f32 %v1115_v48, %v2036_v3 }
 0x283   :  { %v1119_v42 = vmul.f32 0.5, %v1118_v40 }
 0x285   :  { %v1120_v44 = vsub.f32 1.5, %v1119_v42  ;;  %v1065_v45 = vpop.xlane.xlu1 %1064 }
 0x286   :  { %v1738_v46 = vpop.eup %1737  ;;  %v1093_v47 = vmax.f32 %v1065_v45, 1e-16 }
 0x287   :  { %v1121_v49 = vmul.f32 %v1736_v36, %v1120_v44  ;;  %v1127_v50 = vmul.f32 %v1738_v46, %v1092_v37  ;;  %vm1133_vm10 = vweird.f32 %v1738_v46 }
 0x288   :  { %1739 = vrsqrt.f32 %v1093_v47  ;;  %vm1134_vm13 = vmor %vm1132_vm11, %vm1133_vm10  ;;  %vm1142_vm14 = vweird.f32 %v1093_v47 }
 0x289   :  { %v1125_v51 = vsel %vm1124_vm9, %v1736_v36, %v1121_v49  ;;  %v1128_v52 = vmul.f32 %v1738_v46, %v1127_v50 }
 0x28a   :  { %v1267_v55 = vmul.f32 %v1125_v51, %v2044_v21 }
 0x28b   :  { %v1129_v58 = vmul.f32 0.5, %v1128_v52 }
 0x28c   :  { %v1612_v59 = vpack.c.bf16 %v1267_v55, %v1266_v53 }
 0x28d   :  { %v1067_v60 = vpop.xlane.xlu2 %1066  ;;  %v1130_v0 = vsub.f32 1.5, %v1129_v58 }
 0x28e   :  { %v1740_v61 = vpop.eup %1739  ;;  %1613 = vst [vmem:[#allocation11] sm:$0xff] %v1612_v59   ;;  %v1094_v63 = vmax.f32 %v1067_v60, 1e-16 }
 0x28f   :  { %v1137_v1 = vmul.f32 %v1740_v61, %v1093_v47  ;;  %v1131_v5 = vmul.f32 %v1738_v46, %v1130_v0  ;;  %vm1143_vm12 = vweird.f32 %v1740_v61 }
 0x290   :  { %1741 = vrsqrt.f32 %v1094_v63  ;;  %vm1144_vm15 = vmor %vm1142_vm14, %vm1143_vm12  ;;  %vm1152_vm1 = vweird.f32 %v1094_v63 }
 0x291   :  { %v1138_v4 = vmul.f32 %v1740_v61, %v1137_v1  ;;  %v1135_v12 = vsel %vm1134_vm13, %v1738_v46, %v1131_v5 }
 0x292   :  { %v1268_v17 = vmul.f32 %v1135_v12, %v2052_v39 }
 0x293   :  { %v1139_v6 = vmul.f32 0.5, %v1138_v4 }
 0x295   :  { %v1140_v7 = vsub.f32 1.5, %v1139_v6  ;;  %v1069_v9 = vpop.xlane.xlu2 %1068 }
 0x296   :  { %v1742_v3 = vpop.eup %1741  ;;  %v1095_v21 = vmax.f32 %v1069_v9, 1e-16 }
 0x297   :  { %v1141_v13 = vmul.f32 %v1740_v61, %v1140_v7  ;;  %v1147_v14 = vmul.f32 %v1742_v3, %v1094_v63  ;;  %vm1153_vm0 = vweird.f32 %v1742_v3 }
 0x298   :  { %1743 = vrsqrt.f32 %v1095_v21  ;;  %vm1154_vm4 = vmor %vm1152_vm1, %vm1153_vm0  ;;  %vm1162_vm3 = vweird.f32 %v1095_v21 }
 0x299   :  { %v1145_v15 = vsel %vm1144_vm15, %v1740_v61, %v1141_v13  ;;  %v1148_v16 = vmul.f32 %v1742_v3, %v1147_v14 }
 0x29a   :  { %v1269_v18 = vmul.f32 %v1145_v15, %v2060_v56 }
 0x29b   :  { %v1149_v20 = vmul.f32 0.5, %v1148_v16 }
 0x29c   :  { %v1617_v22 = vpack.c.bf16 %v1269_v18, %v1268_v17 }
 0x29d   :  { %v1071_v24 = vpop.xlane.xlu0 %1070  ;;  %v1150_v28 = vsub.f32 1.5, %v1149_v20 }
 0x29e   :  { %v1744_v26 = vpop.eup %1743  ;;  %1649 = vst [vmem:[#allocation11 + $0x8] sm:$0xff] %v1617_v22   ;;  %v1096_v27 = vmax.f32 %v1071_v24, 1e-16 }
 0x29f   :  { %v1157_v30 = vmul.f32 %v1744_v26, %v1095_v21  ;;  %v1151_v32 = vmul.f32 %v1742_v3, %v1150_v28  ;;  %vm1163_vm2 = vweird.f32 %v1744_v26 }
 0x2a0   :  { %1745 = vrsqrt.f32 %v1096_v27  ;;  %vm1164_vm5 = vmor %vm1162_vm3, %vm1163_vm2  ;;  %vm1172_vm7 = vweird.f32 %v1096_v27 }
 0x2a1   :  { %v1158_v31 = vmul.f32 %v1744_v26, %v1157_v30  ;;  %v1155_v37 = vsel %vm1154_vm4, %v1742_v3, %v1151_v32 }
 0x2a2   :  { %v1270_v42 = vmul.f32 %v1155_v37, %v2068_v11 }
 0x2a3   :  { %v1159_v33 = vmul.f32 0.5, %v1158_v31 }
 0x2a5   :  { %v1160_v34 = vsub.f32 1.5, %v1159_v33  ;;  %v1073_v36 = vpop.xlane.xlu1 %1072 }
 0x2a6   :  { %v1746_v39 = vpop.eup %1745  ;;  %v1097_v56 = vmax.f32 %v1073_v36, 1e-16 }
 0x2a7   :  { %v1161_v54 = vmul.f32 %v1744_v26, %v1160_v34  ;;  %v1167_v38 = vmul.f32 %v1746_v39, %v1096_v27  ;;  %vm1173_vm6 = vweird.f32 %v1746_v39 }
 0x2a8   :  { %1747 = vrsqrt.f32 %v1097_v56  ;;  %vm1174_vm9 = vmor %vm1172_vm7, %vm1173_vm6  ;;  %vm1182_vm10 = vweird.f32 %v1097_v56 }
 0x2a9   :  { %v1165_v40 = vsel %vm1164_vm5, %v1744_v26, %v1161_v54  ;;  %v1168_v41 = vmul.f32 %v1746_v39, %v1167_v38 }
 0x2aa   :  { %v1271_v44 = vmul.f32 %v1165_v40, %v2076_v29 }
 0x2ab   :  { %v1169_v45 = vmul.f32 0.5, %v1168_v41 }
 0x2ac   :  { %v1622_v46 = vpack.c.bf16 %v1271_v44, %v1270_v42 }
 0x2ad   :  { %v1075_v47 = vpop.xlane.xlu2 %1074  ;;  %v1170_v50 = vsub.f32 1.5, %v1169_v45 }
 0x2ae   :  { %v1748_v48 = vpop.eup %1747  ;;  %1650 = vst [vmem:[#allocation11 + $0x10] sm:$0xff] %v1622_v46   ;;  %v1098_v49 = vmax.f32 %v1075_v47, 1e-16 }
 0x2af   :  { %v1177_v51 = vmul.f32 %v1748_v48, %v1097_v56  ;;  %v1171_v53 = vmul.f32 %v1746_v39, %v1170_v50  ;;  %vm1183_vm8 = vweird.f32 %v1748_v48 }
 0x2b0   :  { %1749 = vrsqrt.f32 %v1098_v49  ;;  %vm1184_vm11 = vmor %vm1182_vm10, %vm1183_vm8  ;;  %vm1192_vm13 = vweird.f32 %v1098_v49 }
 0x2b1   :  { %v1178_v52 = vmul.f32 %v1748_v48, %v1177_v51  ;;  %v1175_v60 = vsel %vm1174_vm9, %v1746_v39, %v1171_v53 }
 0x2b2   :  { %v1272_v4 = vmul.f32 %v1175_v60, %v2084_v10 }
 0x2b3   :  { %v1179_v55 = vmul.f32 0.5, %v1178_v52 }
 0x2b5   :  { %v1180_v58 = vsub.f32 1.5, %v1179_v55  ;;  %v1077_v59 = vpop.xlane.xlu0 %1076 }
 0x2b6   :  { %v1750_v11 = vpop.eup %1749  ;;  %v1099_v29 = vmax.f32 %v1077_v59, 1e-16 }
 0x2b7   :  { %v1181_v61 = vmul.f32 %v1748_v48, %v1180_v58  ;;  %v1187_v63 = vmul.f32 %v1750_v11, %v1098_v49  ;;  %vm1193_vm12 = vweird.f32 %v1750_v11 }
 0x2b8   :  { %1751 = vrsqrt.f32 %v1099_v29  ;;  %vm1194_vm15 = vmor %vm1192_vm13, %vm1193_vm12  ;;  %vm1202_vm0 = vweird.f32 %v1099_v29 }
 0x2b9   :  { %v1185_v0 = vsel %vm1184_vm11, %v1748_v48, %v1181_v61  ;;  %v1188_v1 = vmul.f32 %v1750_v11, %v1187_v63 }
 0x2ba   :  { %v1273_v5 = vmul.f32 %v1185_v0, %v2092_v2 }
 0x2bb   :  { %v1189_v6 = vmul.f32 0.5, %v1188_v1 }
 0x2bc   :  { %v1627_v7 = vpack.c.bf16 %v1273_v5, %v1272_v4 }
 0x2bd   :  { %v1079_v9 = vpop.xlane.xlu1 %1078  ;;  %v1190_v12 = vsub.f32 1.5, %v1189_v6 }
 0x2be   :  { %v1752_v3 = vpop.eup %1751  ;;  %1651 = vst [vmem:[#allocation11 + $0x18] sm:$0xff] %v1627_v7   ;;  %v1100_v21 = vmax.f32 %v1079_v9, 1e-16 }
 0x2bf   :  { %v1197_v13 = vmul.f32 %v1752_v3, %v1099_v29  ;;  %v1191_v15 = vmul.f32 %v1750_v11, %v1190_v12  ;;  %vm1203_vm14 = vweird.f32 %v1752_v3 }
 0x2c0   :  { %1753 = vrsqrt.f32 %v1100_v21  ;;  %vm1204_vm1 = vmor %vm1202_vm0, %vm1203_vm14  ;;  %vm1212_vm4 = vweird.f32 %v1100_v21 }
 0x2c1   :  { %v1198_v14 = vmul.f32 %v1752_v3, %v1197_v13  ;;  %v1195_v20 = vsel %vm1194_vm15, %v1750_v11, %v1191_v15 }
 0x2c2   :  { %v1274_v28 = vmul.f32 %v1195_v20, %v2100_v23 }
 0x2c3   :  { %v1199_v16 = vmul.f32 0.5, %v1198_v14 }
 0x2c5   :  { %v1200_v17 = vsub.f32 1.5, %v1199_v16  ;;  %v1081_v18 = vpop.xlane.xlu2 %1080 }
 0x2c6   :  { %v1754_v10 = vpop.eup %1753  ;;  %v1101_v2 = vmax.f32 %v1081_v18, 1e-16 }
 0x2c7   :  { %v1201_v22 = vmul.f32 %v1752_v3, %v1200_v17  ;;  %v1207_v24 = vmul.f32 %v1754_v10, %v1100_v21  ;;  %vm1213_vm2 = vweird.f32 %v1754_v10 }
 0x2c8   :  { %1755 = vrsqrt.f32 %v1101_v2  ;;  %vm1214_vm5 = vmor %vm1212_vm4, %vm1213_vm2  ;;  %vm1222_vm6 = vweird.f32 %v1101_v2 }
 0x2c9   :  { %v1205_v26 = vsel %vm1204_vm1, %v1752_v3, %v1201_v22  ;;  %v1208_v27 = vmul.f32 %v1754_v10, %v1207_v24 }
 0x2ca   :  { %v1275_v30 = vmul.f32 %v1205_v26, %v2108_v43 }
 0x2cb   :  { %v1209_v31 = vmul.f32 0.5, %v1208_v27 }
 0x2cc   :  { %v1632_v32 = vpack.c.bf16 %v1275_v30, %v1274_v28 }
 0x2cd   :  { %v1083_v33 = vpop.xlane.xlu0 %1082  ;;  %v1210_v39 = vsub.f32 1.5, %v1209_v31 }
 0x2ce   :  { %v1756_v34 = vpop.eup %1755  ;;  %1652 = vst [vmem:[#allocation11 + $0x20] sm:$0xff] %v1632_v32   ;;  %v1102_v36 = vmax.f32 %v1083_v33, 1e-16 }
 0x2cf   :  { %v1217_v56 = vmul.f32 %v1756_v34, %v1101_v2  ;;  %v1211_v54 = vmul.f32 %v1754_v10, %v1210_v39  ;;  %vm1223_vm3 = vweird.f32 %v1756_v34 }
 0x2d0   :  { %1757 = vrsqrt.f32 %v1102_v36  ;;  %vm1224_vm7 = vmor %vm1222_vm6, %vm1223_vm3  ;;  %vm1232_vm9 = vweird.f32 %v1102_v36 }
 0x2d1   :  { %v1218_v37 = vmul.f32 %v1756_v34, %v1217_v56  ;;  %v1215_v42 = vsel %vm1214_vm5, %v1754_v10, %v1211_v54 }
 0x2d2   :  { %v1276_v48 = vmul.f32 %v1215_v42, %v2116_v62 }
 0x2d3   :  { %v1219_v38 = vmul.f32 0.5, %v1218_v37 }
 0x2d5   :  { %v1220_v40 = vsub.f32 1.5, %v1219_v38  ;;  %v1085_v41 = vpop.xlane.xlu1 %1084 }
 0x2d6   :  { %v1758_v23 = vpop.eup %1757  ;;  %v1103_v43 = vmax.f32 %v1085_v41, 1e-16 }
 0x2d7   :  { %v1221_v44 = vmul.f32 %v1756_v34, %v1220_v40  ;;  %v1227_v45 = vmul.f32 %v1758_v23, %v1102_v36  ;;  %vm1233_vm8 = vweird.f32 %v1758_v23 }
 0x2d8   :  { %1759 = vrsqrt.f32 %v1103_v43  ;;  %vm1234_vm11 = vmor %vm1232_vm9, %vm1233_vm8  ;;  %vm1242_vm12 = vweird.f32 %v1103_v43 }
 0x2d9   :  { %v1225_v46 = vsel %vm1224_vm7, %v1756_v34, %v1221_v44  ;;  %v1228_v47 = vmul.f32 %v1758_v23, %v1227_v45 }
 0x2da   :  { %v1277_v49 = vmul.f32 %v1225_v46, %v2124_v19 }
 0x2db   :  { %v1229_v50 = vmul.f32 0.5, %v1228_v47 }
 0x2dc   :  { %v1637_v51 = vpack.c.bf16 %v1277_v49, %v1276_v48 }
 0x2dd   :  { %v1087_v52 = vpop.xlane.xlu2 %1086  ;;  %v1230_v58 = vsub.f32 1.5, %v1229_v50 }
 0x2de   :  { %v1760_v53 = vpop.eup %1759  ;;  %1653 = vst [vmem:[#allocation11 + $0x28] sm:$0xff] %v1637_v51   ;;  %v1104_v55 = vmax.f32 %v1087_v52, 1e-16 }
 0x2df   :  { %v1237_v59 = vmul.f32 %v1760_v53, %v1103_v43  ;;  %v1231_v29 = vmul.f32 %v1758_v23, %v1230_v58  ;;  %vm1243_vm10 = vweird.f32 %v1760_v53 }
 0x2e0   :  { %1761 = vrsqrt.f32 %v1104_v55  ;;  %vm1244_vm13 = vmor %vm1242_vm12, %vm1243_vm10  ;;  %vm1252_vm15 = vweird.f32 %v1104_v55 }
 0x2e1   :  { %v1238_v11 = vmul.f32 %v1760_v53, %v1237_v59  ;;  %v1235_v0 = vsel %vm1234_vm11, %v1758_v23, %v1231_v29 }
 0x2e2   :  { %v1278_v7 = vmul.f32 %v1235_v0, %v2132_v35 }
 0x2e3   :  { %v1239_v60 = vmul.f32 0.5, %v1238_v11 }
 0x2e5   :  { %v1240_v61 = vsub.f32 1.5, %v1239_v60  ;;  %v1089_v63 = vpop.xlane.xlu0 %1088 }
 0x2e6   :  { %v1762_v62 = vpop.eup %1761  ;;  %v1105_v19 = vmax.f32 %v1089_v63, 1e-16 }
 0x2e7   :  { %v1241_v1 = vmul.f32 %v1760_v53, %v1240_v61  ;;  %v1247_v4 = vmul.f32 %v1762_v62, %v1104_v55  ;;  %vm1253_vm14 = vweird.f32 %v1762_v62 }
 0x2e8   :  { %1763 = vrsqrt.f32 %v1105_v19  ;;  %vm1254_vm1 = vmor %vm1252_vm15, %vm1253_vm14  ;;  %vm1262_vm2 = vweird.f32 %v1105_v19 }
 0x2e9   :  { %v1245_v5 = vsel %vm1244_vm13, %v1760_v53, %v1241_v1  ;;  %v1248_v6 = vmul.f32 %v1762_v62, %v1247_v4 }
 0x2ea   :  { %v1279_v9 = vmul.f32 %v1245_v5, %v2139_v57 }
 0x2eb   :  { %v1249_v3 = vmul.f32 0.5, %v1248_v6 }
 0x2ec   :  { %v1642_v21 = vpack.c.bf16 %v1279_v9, %v1278_v7 }
 0x2ed   :  { %v1250_v13 = vsub.f32 1.5, %v1249_v3 }
 0x2ee   :  { %v1764_v12 = vpop.eup %1763  ;;  %1654 = vst [vmem:[#allocation11 + $0x30] sm:$0xff] %v1642_v21  }
 0x2ef   :  { %v1257_v14 = vmul.f32 %v1764_v12, %v1105_v19  ;;  %v1251_v16 = vmul.f32 %v1762_v62, %v1250_v13  ;;  %vm1263_vm0 = vweird.f32 %v1764_v12 }
 0x2f0   :  { %vm1264_vm4 = vmor %vm1262_vm2, %vm1263_vm0 }
 0x2f1   :  { %v1258_v15 = vmul.f32 %v1764_v12, %v1257_v14  ;;  %v1255_v10 = vsel %vm1254_vm1, %v1762_v62, %v1251_v16 }
 0x2f2   :  { %v1280_v57 = vmul.f32 %v1255_v10, %v2146_v8 }
 0x2f3   :  { %v1259_v17 = vmul.f32 0.5, %v1258_v15 }
 0x2f5   :  { %v1260_v18 = vsub.f32 1.5, %v1259_v17 }
 0x2f7   :  { %v1261_v2 = vmul.f32 %v1764_v12, %v1260_v18 }
 0x2f9   :  { %v1265_v35 = vsel %vm1264_vm4, %v1764_v12, %v1261_v2 }
 0x2fa   :  { %v1281_v20 = vmul.f32 %v1265_v35, %v2153_v25 }
 0x2fc   :  { %v1647_v22 = vpack.c.bf16 %v1281_v20, %v1280_v57 }
 0x2fe   :  { %1655 = vst [vmem:[#allocation11 + $0x38] sm:$0xff] %v1647_v22  }
 0x2ff   :  { %1339 = dma.vmem_to_hbm [thread:$0]  %s1332_s11, 1024, %s1334_s16, [#allocation12], %s1920_s13, %s1920_s13, %s1921_s14  }
 0x300   :  { %1915 = dma.done.wait [#allocation4], 2048  }
 0x301   :  { %1916 = vsyncadd [#allocation4], 4294965248 }
 0x302   :  { %1917 = dma.done.wait [#allocation12], 1024  }
 0x303   :  { %1918 = vsyncadd [#allocation12], 4294966272 }
 0x304   :  { %1348 = vsyncpa [#allocation3], 1 }
 0x305   :  { %1349 = vsyncpa [#allocation6], 1 }
 0x306   :  { %1350 = vsyncpa [#allocation9], 1 }
 0x307   :  { %1351 = vsyncpa [#allocation4], 1 }
 0x308   :  { %1352 = vsyncpa [#allocation12], 1 }

</bundles_post_ra>
